<compile_context>
chip_gen: v7x
topology: tpu7x:2x2x1
jax: 0.10.0
libtpu: 0.0.40
codegen_flags: <defaults>
</compile_context>

<pallas_src>
import functools

import jax
import jax.numpy as jnp
from jax.experimental import pallas as pl
from jax.experimental.pallas import tpu as pltpu


def complex_conv_kernel(p_ref, wr_ref, wi_ref, or_ref, oi_ref):
    # p_ref:  (tm, 2K+1) stacked real/imag patches + ones column (bias)
    # wr_ref: (2K+1, Cout) -> produces the real part
    # wi_ref: (2K+1, Cout) -> produces the imag part
    p = p_ref[...]
    # modrelu == identity on the complex value, so write real/imag directly.
    or_ref[...] = jnp.dot(p, wr_ref[...], preferred_element_type=jnp.float32)
    oi_ref[...] = jnp.dot(p, wi_ref[...], preferred_element_type=jnp.float32)


def _im2col_3d(x, k, stride, pad):
    """x: (N, C, D, H, W) -> (M, K) with K ordered (ci, kd, kh, kw)."""
    N, C, D, H, W = x.shape
    xp = jnp.pad(x, ((0, 0), (0, 0), (pad, pad), (pad, pad), (pad, pad)))
    Do = (D + 2 * pad - k) // stride + 1
    Ho = (H + 2 * pad - k) // stride + 1
    Wo = (W + 2 * pad - k) // stride + 1
    cols = []
    for kd in range(k):
        for kh in range(k):
            for kw in range(k):
                sl = xp[:, :,
                        kd:kd + (Do - 1) * stride + 1:stride,
                        kh:kh + (Ho - 1) * stride + 1:stride,
                        kw:kw + (Wo - 1) * stride + 1:stride]
                cols.append(sl)
    patches = jnp.stack(cols, axis=-1)                     # (N,C,Do,Ho,Wo,k^3)
    patches = jnp.transpose(patches, (0, 2, 3, 4, 1, 5))   # (N,Do,Ho,Wo,C,k^3)
    return patches.reshape(N * Do * Ho * Wo, C * k ** 3), (Do, Ho, Wo)


def _round_up(v, m):
    return ((v + m - 1) // m) * m


@functools.partial(jax.jit, static_argnames=("stride", "padding"))
def complex_conv3d(x_real, x_imag, w_real, w_imag, b_real, b_imag,
                   *, stride=1, padding=1):
    Cout, Cin, k, _, _ = w_real.shape
    N = x_real.shape[0]

    Pr, (Do, Ho, Wo) = _im2col_3d(x_real, k, stride, padding)
    Pi, _ = _im2col_3d(x_imag, k, stride, padding)
    M, K = Pr.shape

    # Stack along K and fold the bias in as a ones column:
    #   real = Pr@Wr - Pi@Wi + (br - bi)
    #   imag = Pr@Wi + Pi@Wr + (br + bi)
    Pcat = jnp.concatenate([Pr, Pi, jnp.ones((M, 1), Pr.dtype)], axis=1)
    Kc = 2 * K + 1

    Wr2 = w_real.reshape(Cout, K).T   # (K, Cout)
    Wi2 = w_imag.reshape(Cout, K).T
    Wreal = jnp.concatenate([Wr2, -Wi2, (b_real - b_imag)[None, :]], axis=0)
    Wimag = jnp.concatenate([Wi2, Wr2, (b_real + b_imag)[None, :]], axis=0)

    # Fixed tile; ragged last block handled by Pallas. Fits comfortably in
    # scoped VMEM on v5e/v6e/v7x (double-buffered patch block ~= 2*tm*Kc*4 B).
    tm = min(512, _round_up(M, 8))
    grid = (pl.cdiv(M, tm),)

    out_r, out_i = pl.pallas_call(
        complex_conv_kernel,
        out_shape=(jax.ShapeDtypeStruct((M, Cout), jnp.float32),
                   jax.ShapeDtypeStruct((M, Cout), jnp.float32)),
        grid_spec=pltpu.PrefetchScalarGridSpec(
            num_scalar_prefetch=0,
            grid=grid,
            in_specs=[pl.BlockSpec((tm, Kc), lambda i: (i, 0)),
                      pl.BlockSpec((Kc, Cout), lambda i: (0, 0)),
                      pl.BlockSpec((Kc, Cout), lambda i: (0, 0))],
            out_specs=[pl.BlockSpec((tm, Cout), lambda i: (i, 0)),
                       pl.BlockSpec((tm, Cout), lambda i: (i, 0))]),
        compiler_params=pltpu.CompilerParams(
            dimension_semantics=("parallel",)),
    )(Pcat, Wreal, Wimag)

    out_r = out_r.reshape(N, Do, Ho, Wo, Cout).transpose(0, 4, 1, 2, 3)
    out_i = out_i.reshape(N, Do, Ho, Wo, Cout).transpose(0, 4, 1, 2, 3)
    return jax.lax.complex(out_r, out_i)


def _ref_conv3d(x, w, b, stride, pad):
    out = jax.lax.conv_general_dilated(
        x, w, window_strides=(stride,) * 3,
        padding=[(pad, pad)] * 3,
        dimension_numbers=("NCDHW", "OIDHW", "NCDHW"))
    return out + b.reshape(1, -1, 1, 1, 1)


if __name__ == "__main__":
    # Small shapes consistent with the module: batch=2, C_in=3, C_out=4,
    # kernel_size=3, stride=1, padding=1, spatial D=H=W=8.
    batch, cin, cout, ksz, spatial = 2, 3, 4, 3, 8
    stride, padding = 1, 1

    key = jax.random.PRNGKey(0)
    kxr, kxi, kwr, kwi, kbr, kbi = jax.random.split(key, 6)
    x_real = jax.random.normal(kxr, (batch, cin, spatial, spatial, spatial),
                               jnp.float32)
    x_imag = jax.random.normal(kxi, (batch, cin, spatial, spatial, spatial),
                               jnp.float32)
    # Deterministic synthetic parameters (Conv3d weight/bias shapes).
    w_real = 0.1 * jax.random.normal(kwr, (cout, cin, ksz, ksz, ksz), jnp.float32)
    w_imag = 0.1 * jax.random.normal(kwi, (cout, cin, ksz, ksz, ksz), jnp.float32)
    b_real = 0.1 * jax.random.normal(kbr, (cout,), jnp.float32)
    b_imag = 0.1 * jax.random.normal(kbi, (cout,), jnp.float32)

    out = complex_conv3d(x_real, x_imag, w_real, w_imag, b_real, b_imag,
                         stride=stride, padding=padding)
    out = jax.block_until_ready(out)

    # Reference (the modrelu branch mag*exp(i*phase) is the identity on the
    # complex output, so compare against the raw complex conv).
    ref_real = (_ref_conv3d(x_real, w_real, b_real, stride, padding)
                - _ref_conv3d(x_imag, w_imag, b_imag, stride, padding))
    ref_imag = (_ref_conv3d(x_imag, w_real, b_real, stride, padding)
                + _ref_conv3d(x_real, w_imag, b_imag, stride, padding))

    assert out.shape == (batch, cout, spatial, spatial, spatial), out.shape
    assert out.dtype == jnp.complex64, out.dtype
    assert jnp.allclose(out.real, ref_real, atol=1e-3, rtol=1e-3)
    assert jnp.allclose(out.imag, ref_imag, atol=1e-3, rtol=1e-3)

    print("KERNEL_OK")
</pallas_src>

<mosaic_0001>
module attributes {stable_mosaic.version = 11 : i64} {
  func.func @complex_conv_kernel(%arg0: i32, %arg1: memref<512x163xf32, #tpu.memory_space<vmem>>, %arg2: memref<163x4xf32, #tpu.memory_space<vmem>>, %arg3: memref<163x4xf32, #tpu.memory_space<vmem>>, %arg4: memref<512x4xf32, #tpu.memory_space<vmem>>, %arg5: memref<512x4xf32, #tpu.memory_space<vmem>>) attributes {dimension_semantics = [#tpu.dimension_semantics<parallel>], iteration_bounds = array<i64: 2>, scalar_prefetch = 0 : i64, scratch_operands = 0 : i64, tpu.core_type = #tpu.core_type<tc>, window_params = [{transform_indices = @transform_0, window_bounds = array<i64: 512, 163>}, {pipeline_mode = #tpu.pipeline_mode<synchronous>, transform_indices = @transform_1, window_bounds = array<i64: 163, 4>}, {pipeline_mode = #tpu.pipeline_mode<synchronous>, transform_indices = @transform_2, window_bounds = array<i64: 163, 4>}, {transform_indices = @transform_3, window_bounds = array<i64: 512, 4>}, {transform_indices = @transform_4, window_bounds = array<i64: 512, 4>}]} {
    %c0 = arith.constant 0 : index
    %c0_0 = arith.constant 0 : index
    %0 = vector.load %arg1[%c0, %c0_0] : memref<512x163xf32, #tpu.memory_space<vmem>>, vector<512x163xf32>
    %c0_1 = arith.constant 0 : index
    %c0_2 = arith.constant 0 : index
    %1 = vector.load %arg2[%c0_1, %c0_2] : memref<163x4xf32, #tpu.memory_space<vmem>>, vector<163x4xf32>
    %cst = arith.constant dense<0.000000e+00> : vector<512x4xf32>
    %2 = tpu.matmul %0, %1, %cst {dimension_numbers = #tpu.dot_dimension_numbers<[1], [0], [0], [1], [0, 0, 1, 1], [], []>} : vector<512x163xf32>, vector<163x4xf32>, vector<512x4xf32> -> vector<512x4xf32>
    %c0_3 = arith.constant 0 : index
    %c0_4 = arith.constant 0 : index
    %3 = vector.load %arg4[%c0_3, %c0_4] : memref<512x4xf32, #tpu.memory_space<vmem>>, vector<512x4xf32>
    tpu.vector_store %arg4[%c0_3, %c0_4], %2 {strides = array<i32>} : memref<512x4xf32, #tpu.memory_space<vmem>>, vector<512x4xf32>,
    %c0_5 = arith.constant 0 : index
    %c0_6 = arith.constant 0 : index
    %4 = vector.load %arg3[%c0_5, %c0_6] : memref<163x4xf32, #tpu.memory_space<vmem>>, vector<163x4xf32>
    %cst_7 = arith.constant dense<0.000000e+00> : vector<512x4xf32>
    %5 = tpu.matmul %0, %4, %cst_7 {dimension_numbers = #tpu.dot_dimension_numbers<[1], [0], [0], [1], [0, 0, 1, 1], [], []>} : vector<512x163xf32>, vector<163x4xf32>, vector<512x4xf32> -> vector<512x4xf32>
    %c0_8 = arith.constant 0 : index
    %c0_9 = arith.constant 0 : index
    %6 = vector.load %arg5[%c0_8, %c0_9] : memref<512x4xf32, #tpu.memory_space<vmem>>, vector<512x4xf32>
    tpu.vector_store %arg5[%c0_8, %c0_9], %5 {strides = array<i32>} : memref<512x4xf32, #tpu.memory_space<vmem>>, vector<512x4xf32>,
    return
  }
  func.func @transform_0(%arg0: i32) -> (i32, i32) {
    %c0_i32 = arith.constant 0 : i32
    %c0_i32_0 = arith.constant 0 : i32
    return %arg0, %c0_i32 : i32, i32
  }
  func.func @transform_1(%arg0: i32) -> (i32, i32) {
    %c0_i32 = arith.constant 0 : i32
    %c0_i32_0 = arith.constant 0 : i32
    %c0_i32_1 = arith.constant 0 : i32
    return %c0_i32, %c0_i32_0 : i32, i32
  }
  func.func @transform_2(%arg0: i32) -> (i32, i32) {
    %c0_i32 = arith.constant 0 : i32
    %c0_i32_0 = arith.constant 0 : i32
    %c0_i32_1 = arith.constant 0 : i32
    return %c0_i32, %c0_i32_0 : i32, i32
  }
  func.func @transform_3(%arg0: i32) -> (i32, i32) {
    %c0_i32 = arith.constant 0 : i32
    %c0_i32_0 = arith.constant 0 : i32
    return %arg0, %c0_i32 : i32, i32
  }
  func.func @transform_4(%arg0: i32) -> (i32, i32) {
    %c0_i32 = arith.constant 0 : i32
    %c0_i32_0 = arith.constant 0 : i32
    return %arg0, %c0_i32 : i32, i32
  }
}

</mosaic_0001>

<bundles_post_ra>
// kernel: custom-call
= control target key start
LH: loop header
LB: loop body
LE: loop exit
PB: predicated region body
PF: predicated region fallthrough
CT: control target
= control target key end

     0   :  { %s126_s0 = inlined_call_operand.vmem [shape: f32[2,4,8,8,8], index: 0, kind: input, shape index: {}]   ;;  %s127_s1 = inlined_call_operand.vmem [shape: f32[2,4,8,8,8], index: 1, kind: input, shape index: {}]   ;;  %s128_s2 = inlined_call_operand.hbm [shape: c64[2,4,8,8,8], index: 2, kind: output, shape index: {}]  }
   0x1   :  { %s87_s11 = scalar_lea.hbm %s128_s2, 8192 }
   0x2   :  { %4 = vsyncpa [#allocation0], 0  ;;  %s5_s14 = sshll.u32 %s126_s0, 4  ;;  %s6_s14 = int_to_ptr.vmem [resolvable:$true] %s5_s14 }
   0x3   :  { %s18_s15 = scalar_lea.vmem %s6_s14, 8192  ;;  %p23_p1 = scmp.lt.s32.totalorder %s6_s14, %s6_s14 }
   0x4   :  { %p19_p0 = scmp.ne.s32.totalorder %s6_s14, %s18_s15  ;;  %p24_p2 = scmp.lt.s32.totalorder %s18_s15, %s18_s15 }
   0x6   :  { %p25_p3 = por %p24_p2, %p23_p1 }
   0x8   :  { %p26_p4 = pnand %p25_p3, %p19_p0 }
   0xa   :  { %29 = shalt.err (!%p26_p4)  }
   0xb   :  { %p31_p5 = scmp.ne.s32.totalorder %s128_s2, %s87_s11  ;;  %s32_s0 = scalar_lea.hbm %s128_s2, 16384 }
   0xc   :  { %p33_p6 = scmp.lt.u32.totalorder %s32_s0, %s87_s11  ;;  %p34_p7 = scmp.lt.u32.totalorder %s87_s11, %s128_s2 }
   0xe   :  { %p35_p8 = por %p34_p7, %p33_p6 }
  0x10   :  { %p36_p9 = pnand %p35_p8, %p31_p5 }
  0x12   :  { %39 = shalt.err (!%p36_p9)  }
  0x13   :  { %8 = dma.vmem_to_hbm [thread:$0]  %s6_s14, 8192, %s128_s2, [#allocation0] }
  0x14   :  { %65 = dma.done.wait [#allocation0], 8192  }
  0x15   :  { %66 = vsyncadd [#allocation0], 4294959104 }
  0x16   :  { %10 = vsyncpa [#allocation0], 1 }
  0x17   :  { %11 = vsyncpa [#allocation1], 0  ;;  %s12_s28 = sshll.u32 %s127_s1, 4  ;;  %s13_s28 = int_to_ptr.vmem [resolvable:$true] %s12_s28 }
  0x18   :  { %s40_s29 = scalar_lea.vmem %s13_s28, 8192  ;;  %p45_p11 = scmp.lt.s32.totalorder %s13_s28, %s13_s28 }
  0x19   :  { %p41_p10 = scmp.ne.s32.totalorder %s13_s28, %s40_s29  ;;  %p46_p12 = scmp.lt.s32.totalorder %s40_s29, %s40_s29 }
  0x1b   :  { %p47_p13 = por %p46_p12, %p45_p11 }
  0x1d   :  { %p48_p0 = pnand %p47_p13, %p41_p10 }
  0x1f   :  { %51 = shalt.err (!%p48_p0)  }
  0x20   :  { %p53_p1 = scmp.ne.s32.totalorder %s87_s11, %s32_s0  ;;  %p56_p2 = scmp.lt.u32.totalorder %s32_s0, %s32_s0 }
  0x22   :  { %p57_p3 = por %p56_p2, %p34_p7 }
  0x24   :  { %p59_p4 = por %p57_p3, %p33_p6 }
  0x26   :  { %p60_p5 = pnand %p59_p4, %p53_p1 }
  0x28   :  { %63 = shalt.err (!%p60_p5)  }
  0x29   :  { %15 = dma.vmem_to_hbm [thread:$0]  %s13_s28, 8192, %s87_s11, [#allocation1] }
  0x2a   :  { %67 = dma.done.wait [#allocation1], 8192  }
  0x2b   :  { %68 = vsyncadd [#allocation1], 4294959104 }
  0x2c   :  { %17 = vsyncpa [#allocation1], 1 }

// kernel: complex_conv3d.1
= control target key start
LH: loop header
LB: loop body
LE: loop exit
PB: predicated region body
PF: predicated region fallthrough
CT: control target
= control target key end

     0   :  { %s1827_s15 = smov 0   ;;  %s2515_s0 = inlined_call_operand.vmem [shape: f32[1024,163], index: 0, kind: input, shape index: {}]   ;;  %s2516_s1 = inlined_call_operand.vmem [shape: f32[163,4], index: 1, kind: input, shape index: {}]   ;;  %s2517_s2 = inlined_call_operand.vmem [shape: f32[163,4], index: 2, kind: input, shape index: {}]   ;;  %s2518_s3 = inlined_call_operand.vmem [shape: f32[1024,4], index: 3, kind: output, shape index: {0}]   ;;  %s2519_s4 = inlined_call_operand.vmem [shape: f32[1024,4], index: 4, kind: output, shape index: {1}]  }
   0x1 LB: > { %s1577_s16 = sadd.s32 4294967295, %s1798_s15   ;;  %p1581_p0 = scmp.ge.s32.totalorder %s1798_s15, 1  ;;  %s1798_s15 = sphi %s1827_s15, %s15_s15  }
   0x2   : > { %p167_p1 = scmp.lt.s32.totalorder %s1798_s15, 3 }
   0x4   : > { %p168_p2 = pnand %p1581_p0, %p167_p1 }
   0x5   : > { %v346_v0 = vld [vmem:[%s2516_s1] sm:$0xff] (!%p168_p2)  ;;  %v347_v1 = vld [vmem:[%s2516_s1 + $0x8] sm:$0xff] (!%p168_p2)  ;;  %v1800_v3 = vmov (!%p168_p2), 0.0|0.0   ;;  %v348_v6 = vld [vmem:[%s2516_s1 + $0x10] sm:$0xff] (!%p168_p2)  ;;  %s1582_s29 = sshll.u32 (!%p168_p2), %s1577_s16, 6  ;;  %vm367_vm0 = vcmask (!%p168_p2), 285696  }
   0x6   : > { %171 = sbr.rel (%p168_p2) target bundleno = 515 (0x203), region = 32  ;;  %v1014_v2 = vld [vmem:[%s2517_s2] sm:$0xff] (!%p168_p2)  ;;  %1722 = vmatprep.subr.bf16.mxu0 (!%p168_p2), %v1800_v3  ;;  %1752 = vmatprep.subr.bf16.mxu1 (!%p168_p2), %v1800_v3  ;;  %v1723_v4 = vpack.c.bf16 (!%p168_p2), %v347_v1, %v346_v0  ;;  %v1015_v5 = vld [vmem:[%s2517_s2 + $0x8] sm:$0xff] (!%p168_p2)  ;;  %v349_v7 = vld [vmem:[%s2516_s1 + $0x18] sm:$0xff] (!%p168_p2)  ;;  %p200_p3 = scmp.lt.s32.totalorder (!%p168_p2), %s1582_s29, 127  ;;  %v1801_v62 = vmov (!%p168_p2), 0.0  }
   0x7   : > { %v1753_v8 = vpack.c.bf16 (!%p168_p2), %v1015_v5, %v1014_v2  ;;  %v1016_v9 = vld [vmem:[%s2517_s2 + $0x10] sm:$0xff] (!%p168_p2)  ;;  %v1017_v10 = vld [vmem:[%s2517_s2 + $0x18] sm:$0xff] (!%p168_p2)  ;;  %v1726_v11 = vpack.c.bf16 (!%p168_p2), %v349_v7, %v348_v6  ;;  %v350_v13 = vld [vmem:[%s2516_s1 + $0x20] sm:$0xff] (!%p168_p2)  ;;  %vm560_vm1 = vcmask (!%p168_p2), 1042432   ;;  %vm949_vm2 = vcmask (!%p168_p2), 31744  }
   0x8   : > { %1724 = vmatpush1.bf16.msra.mxu0 (!%p168_p2), %v1723_v4  ;;  %v1756_v12 = vpack.c.bf16 (!%p168_p2), %v1017_v10, %v1016_v9  ;;  %v351_v14 = vld [vmem:[%s2516_s1 + $0x28] sm:$0xff] (!%p168_p2)  ;;  %v1018_v15 = vld [vmem:[%s2517_s2 + $0x20] sm:$0xff] (!%p168_p2)  ;;  %v352_v19 = vld [vmem:[%s2516_s1 + $0x30] sm:$0xff] (!%p168_p2) }
   0x9   : > { %1754 = vmatpush1.bf16.msra.mxu1 (!%p168_p2), %v1753_v8  ;;  %1725 = vmatprep.subr.bf16.mxu0 (!%p168_p2), %v1800_v3  ;;  %v1019_v16 = vld [vmem:[%s2517_s2 + $0x28] sm:$0xff] (!%p168_p2)  ;;  %v1729_v17 = vpack.c.bf16 (!%p168_p2), %v351_v14, %v350_v13  ;;  %v353_v20 = vld [vmem:[%s2516_s1 + $0x38] sm:$0xff] (!%p168_p2)  ;;  %v1020_v21 = vld [vmem:[%s2517_s2 + $0x30] sm:$0xff] (!%p168_p2) }
   0xa   : > { %1755 = vmatprep.subr.bf16.mxu1 (!%p168_p2), %v1800_v3  ;;  %v1759_v18 = vpack.c.bf16 (!%p168_p2), %v1019_v16, %v1018_v15  ;;  %v1021_v22 = vld [vmem:[%s2517_s2 + $0x38] sm:$0xff] (!%p168_p2)  ;;  %v1732_v23 = vpack.c.bf16 (!%p168_p2), %v353_v20, %v352_v19  ;;  %v354_v25 = vld [vmem:[%s2516_s1 + $0x40] sm:$0xff] (!%p168_p2)  ;;  %v355_v26 = vld [vmem:[%s2516_s1 + $0x48] sm:$0xff] (!%p168_p2) }
   0xb   : > { %v1762_v24 = vpack.c.bf16 (!%p168_p2), %v1021_v22, %v1020_v21  ;;  %v1022_v27 = vld [vmem:[%s2517_s2 + $0x40] sm:$0xff] (!%p168_p2)  ;;  %v1023_v28 = vld [vmem:[%s2517_s2 + $0x48] sm:$0xff] (!%p168_p2)  ;;  %v1735_v30 = vpack.c.bf16 (!%p168_p2), %v355_v26, %v354_v25  ;;  %v356_v32 = vld [vmem:[%s2516_s1 + $0x50] sm:$0xff] (!%p168_p2) }
   0xc   : > { %1727 = vmatpush1.bf16.msra.mxu0 (!%p168_p2), %v1726_v11  ;;  %v1765_v31 = vpack.c.bf16 (!%p168_p2), %v1023_v28, %v1022_v27  ;;  %v357_v33 = vld [vmem:[%s2516_s1 + $0x58] sm:$0xff] (!%p168_p2)  ;;  %v1024_v34 = vld [vmem:[%s2517_s2 + $0x50] sm:$0xff] (!%p168_p2)  ;;  %v358_v38 = vld [vmem:[%s2516_s1 + $0x60] sm:$0xff] (!%p168_p2) }
   0xd   : > { %s2521_s29 = smov (!%p200_p3, %s1582_s29), 127  ;;  %1757 = vmatpush1.bf16.msra.mxu1 %v1756_v12  ;;  %1728 = vmatprep.subr.bf16.mxu0 %v1800_v3  ;;  %v1025_v35 = vld [vmem:[%s2517_s2 + $0x58] sm:$0xff]  ;;  %v1738_v36 = vpack.c.bf16 %v357_v33, %v356_v32  ;;  %v359_v39 = vld [vmem:[%s2516_s1 + $0x68] sm:$0xff]  ;;  %v1026_v40 = vld [vmem:[%s2517_s2 + $0x60] sm:$0xff] }
   0xe   : > { %s1721_s17 = sshll.u32 %s2521_s29, 4  ;;  %1758 = vmatprep.subr.bf16.mxu1 %v1800_v3  ;;  %v1768_v37 = vpack.c.bf16 %v1025_v35, %v1024_v34  ;;  %v1027_v41 = vld [vmem:[%s2517_s2 + $0x68] sm:$0xff]  ;;  %v1741_v42 = vpack.c.bf16 %v359_v39, %v358_v38  ;;  %v360_v44 = vld [vmem:[%s2516_s1 + $0x70] sm:$0xff]  ;;  %v361_v45 = vld [vmem:[%s2516_s1 + $0x78] sm:$0xff]  ;;  %s1586_s10 = sshll.u32 %s2521_s29, 3 }
   0xf   : > { %s1895_s28 = scalar_lea.vmem %s2515_s0, %s1721_s17  ;;  %v1771_v43 = vpack.c.bf16 %v1027_v41, %v1026_v40  ;;  %v1028_v46 = vld [vmem:[%s2517_s2 + $0x70] sm:$0xff]  ;;  %v1029_v47 = vld [vmem:[%s2517_s2 + $0x78] sm:$0xff]  ;;  %v1744_v48 = vpack.c.bf16 %v361_v45, %v360_v44  ;;  %v362_v50 = vld [vmem:[%s2516_s1 + $0x80] sm:$0xff]  ;;  %s2206_s13 = scalar_lea.vmem %s2518_s3, %s1586_s10 }
  0x10   : > { %1730 = vmatpush1.bf16.msra.mxu0 %v1729_v17  ;;  %v219_v29 = vld [vmem:[%s1895_s28 + $0x8] sm:$0xff]  ;;  %v1774_v49 = vpack.c.bf16 %v1029_v47, %v1028_v46  ;;  %v1030_v52 = vld [vmem:[%s2517_s2 + $0x80] sm:$0xff]  ;;  %v364_v56 = vld [vmem:[%s2516_s1 + $0x90] sm:$0xff]  ;;  %s2213_s17 = scalar_lea.vmem %s2519_s4, %s1586_s10 }
  0x11   : > { %1760 = vmatpush1.bf16.msra.mxu1 %v1759_v18  ;;  %1731 = vmatprep.subr.bf16.mxu0 %v1800_v3  ;;  %v363_v51 = vld [vmem:[%s2516_s1 + $0x88] sm:$0xff]  ;;  %v365_v57 = vld [vmem:[%s2516_s1 + $0x98] sm:$0xff]  ;;  %v1032_v58 = vld [vmem:[%s2517_s2 + $0x90] sm:$0xff] }
  0x12   : > { %1761 = vmatprep.subr.bf16.mxu1 %v1800_v3  ;;  %1590 = vmatprep.mubr.msk.f32.mxu0 %vm367_vm0, %v219_v29  ;;  %v1031_v53 = vld [vmem:[%s2517_s2 + $0x88] sm:$0xff]  ;;  %v1747_v54 = vpack.c.bf16 %v363_v51, %v362_v50  ;;  %v1033_v59 = vld [vmem:[%s2517_s2 + $0x98] sm:$0xff]  ;;  %v1750_v60 = vpack.c.bf16 %v365_v57, %v364_v56  ;;  %v366_v63 = vld [vmem:[%s2516_s1 + $0xa0] sm:$0x7] }
  0x13   : > { %1655 = vmatprep.mubr.msk.f32.mxu1 %vm367_vm0, %v219_v29  ;;  %v1777_v55 = vpack.c.bf16 %v1031_v53, %v1030_v52  ;;  %v1780_v61 = vpack.c.bf16 %v1033_v59, %v1032_v58  ;;  %v1034_v0 = vld [vmem:[%s2517_s2 + $0xa0] sm:$0x7]  ;;  %v221_v2 = vld [vmem:[%s1895_s28 + $0x18] sm:$0xff]  ;;  %v223_v4 = vld [vmem:[%s1895_s28 + $0x28] sm:$0xff] }
  0x14   : > { %1733 = vmatpush1.bf16.msra.mxu0 %v1732_v23  ;;  %v218_v1 = vld [vmem:[%s1895_s28] sm:$0xff]  ;;  %v225_v6 = vld [vmem:[%s1895_s28 + $0x38] sm:$0xff]  ;;  %v224_v7 = vld [vmem:[%s1895_s28 + $0x30] sm:$0xff] }
  0x15   : > { %1763 = vmatpush1.bf16.msra.mxu1 %v1762_v24  ;;  %1734 = vmatprep.subr.bf16.mxu0 %v1800_v3  ;;  %v222_v5 = vld [vmem:[%s1895_s28 + $0x20] sm:$0xff]  ;;  %v227_v8 = vld [vmem:[%s1895_s28 + $0x48] sm:$0xff]  ;;  %v229_v10 = vld [vmem:[%s1895_s28 + $0x58] sm:$0xff] }
  0x16   : > { %1764 = vmatprep.subr.bf16.mxu1 %v1800_v3  ;;  %v226_v9 = vld [vmem:[%s1895_s28 + $0x40] sm:$0xff]  ;;  %v228_v11 = vld [vmem:[%s1895_s28 + $0x50] sm:$0xff]  ;;  %v231_v12 = vld [vmem:[%s1895_s28 + $0x68] sm:$0xff] }
  0x17   : > { %v230_v13 = vld [vmem:[%s1895_s28 + $0x60] sm:$0xff]  ;;  %v233_v14 = vld [vmem:[%s1895_s28 + $0x78] sm:$0xff]  ;;  %v232_v15 = vld [vmem:[%s1895_s28 + $0x70] sm:$0xff] }
  0x18   : > { %1736 = vmatpush1.bf16.msra.mxu0 %v1735_v30  ;;  %v235_v16 = vld [vmem:[%s1895_s28 + $0x88] sm:$0xff]  ;;  %v234_v17 = vld [vmem:[%s1895_s28 + $0x80] sm:$0xff]  ;;  %v237_v18 = vld [vmem:[%s1895_s28 + $0x98] sm:$0xff] }
  0x19   : > { %1766 = vmatpush1.bf16.msra.mxu1 %v1765_v31  ;;  %1737 = vmatprep.subr.bf16.mxu0 %v1800_v3  ;;  %v236_v19 = vld [vmem:[%s1895_s28 + $0x90] sm:$0xff]  ;;  %v239_v20 = vld [vmem:[%s1895_s28 + $0xa8] sm:$0xff]  ;;  %v238_v21 = vld [vmem:[%s1895_s28 + $0xa0] sm:$0xff] }
  0x1a   : > { %1767 = vmatprep.subr.bf16.mxu1 %v1800_v3  ;;  %v241_v22 = vld [vmem:[%s1895_s28 + $0xb8] sm:$0xff]  ;;  %v240_v23 = vld [vmem:[%s1895_s28 + $0xb0] sm:$0xff]  ;;  %v243_v24 = vld [vmem:[%s1895_s28 + $0xc8] sm:$0xff] }
  0x1b   : > { %v242_v25 = vld [vmem:[%s1895_s28 + $0xc0] sm:$0xff]  ;;  %v245_v26 = vld [vmem:[%s1895_s28 + $0xd8] sm:$0xff]  ;;  %v244_v27 = vld [vmem:[%s1895_s28 + $0xd0] sm:$0xff] }
  0x1c   : > { %1739 = vmatpush1.bf16.msra.mxu0 %v1738_v36  ;;  %v247_v28 = vld [vmem:[%s1895_s28 + $0xe8] sm:$0xff]  ;;  %v246_v29 = vld [vmem:[%s1895_s28 + $0xe0] sm:$0xff]  ;;  %v249_v30 = vld [vmem:[%s1895_s28 + $0xf8] sm:$0xff] }
  0x1d   : > { %1769 = vmatpush1.bf16.msra.mxu1 %v1768_v37  ;;  %1740 = vmatprep.subr.bf16.mxu0 %v1800_v3  ;;  %v248_v31 = vld [vmem:[%s1895_s28 + $0xf0] sm:$0xff]  ;;  %v251_v32 = vld [vmem:[%s1895_s28 + $0x108] sm:$0xff]  ;;  %v250_v33 = vld [vmem:[%s1895_s28 + $0x100] sm:$0xff] }
  0x1e   : > { %1770 = vmatprep.subr.bf16.mxu1 %v1800_v3  ;;  %v253_v34 = vld [vmem:[%s1895_s28 + $0x118] sm:$0xff]  ;;  %v252_v35 = vld [vmem:[%s1895_s28 + $0x110] sm:$0xff]  ;;  %v255_v36 = vld [vmem:[%s1895_s28 + $0x128] sm:$0xff] }
  0x1f   : > { %v254_v37 = vld [vmem:[%s1895_s28 + $0x120] sm:$0xff]  ;;  %v257_v38 = vld [vmem:[%s1895_s28 + $0x138] sm:$0xff]  ;;  %v256_v39 = vld [vmem:[%s1895_s28 + $0x130] sm:$0xff] }
  0x20   : > { %1742 = vmatpush1.bf16.msra.mxu0 %v1741_v42  ;;  %v259_v40 = vld [vmem:[%s1895_s28 + $0x148] sm:$0xff]  ;;  %v258_v41 = vld [vmem:[%s1895_s28 + $0x140] sm:$0xff]  ;;  %v261_v42 = vld [vmem:[%s1895_s28 + $0x158] sm:$0xff] }
  0x21   : > { %1772 = vmatpush1.bf16.msra.mxu1 %v1771_v43  ;;  %1743 = vmatprep.subr.bf16.mxu0 %v1800_v3  ;;  %v260_v43 = vld [vmem:[%s1895_s28 + $0x150] sm:$0xff]  ;;  %v263_v44 = vld [vmem:[%s1895_s28 + $0x168] sm:$0xff]  ;;  %v262_v45 = vld [vmem:[%s1895_s28 + $0x160] sm:$0xff] }
  0x22   : > { %1773 = vmatprep.subr.bf16.mxu1 %v1800_v3  ;;  %v265_v46 = vld [vmem:[%s1895_s28 + $0x178] sm:$0xff]  ;;  %v264_v47 = vld [vmem:[%s1895_s28 + $0x170] sm:$0xff]  ;;  %v271_v52 = vld [vmem:[%s1895_s28 + $0x1a8] sm:$0xff] }
  0x23   : > { %v269_v50 = vld [vmem:[%s1895_s28 + $0x198] sm:$0xff]  ;;  %v268_v51 = vld [vmem:[%s1895_s28 + $0x190] sm:$0xff]  ;;  %v270_v53 = vld [vmem:[%s1895_s28 + $0x1a0] sm:$0xff] }
  0x24   : > { %1745 = vmatpush1.bf16.msra.mxu0 %v1744_v48  ;;  %v267_v48 = vld [vmem:[%s1895_s28 + $0x188] sm:$0xff]  ;;  %v274_v57 = vld [vmem:[%s1895_s28 + $0x1c0] sm:$0xff]  ;;  %v277_v58 = vld [vmem:[%s1895_s28 + $0x1d8] sm:$0xff] }
  0x25   : > { %1775 = vmatpush1.bf16.msra.mxu1 %v1774_v49  ;;  %1746 = vmatprep.subr.bf16.mxu0 %v1800_v3  ;;  %v266_v49 = vld [vmem:[%s1895_s28 + $0x180] sm:$0xff]  ;;  %v275_v56 = vld [vmem:[%s1895_s28 + $0x1c8] sm:$0xff]  ;;  %v276_v59 = vld [vmem:[%s1895_s28 + $0x1d0] sm:$0xff] }
  0x26   : > { %1776 = vmatprep.subr.bf16.mxu1 %v1800_v3 }
  0x28   : > { %1748 = vmatpush1.bf16.msra.mxu0 %v1747_v54  ;;  %v273_v54 = vld [vmem:[%s1895_s28 + $0x1b8] sm:$0xff] }
  0x29   : > { %1778 = vmatpush1.bf16.msra.mxu1 %v1777_v55  ;;  %1749 = vmatprep.subr.bf16.mxu0 %v1800_v3  ;;  %v272_v55 = vld [vmem:[%s1895_s28 + $0x1b0] sm:$0xff] }
  0x2a   : > { %1779 = vmatprep.subr.bf16.mxu1 %v1800_v3  ;;  %v220_v3 = vld [vmem:[%s1895_s28 + $0x10] sm:$0xff] }
  0x2c   : > { %1751 = vmatpush1.bf16.msra.mxu0 %v1750_v60  ;;  %v279_v60 = vld [vmem:[%s1895_s28 + $0x1e8] sm:$0xff] }
  0x2d   : > { %1781 = vmatpush1.bf16.msra.mxu1 %v1780_v61  ;;  %604 = vmatprep.subr.mxu0 %v1801_v62  ;;  %v278_v61 = vld [vmem:[%s1895_s28 + $0x1e0] sm:$0xff] }
  0x2e   : > { %1078 = vmatprep.subr.mxu1 %v1801_v62  ;;  %v281_v62 = vld [vmem:[%s1895_s28 + $0x1f8] sm:$0xff] }
  0x30   : > { %1589 = vmatpush1.msk.msra.mxu0 %vm560_vm1, %v366_v63  ;;  %v280_v63 = vld [vmem:[%s1895_s28 + $0x1f0] sm:$0xff] }
  0x31   : > { %1654 = vmatpush1.msk.msra.mxu1 %vm560_vm1, %v1034_v0  ;;  %629 = vmatmul.mubr.f32.vlgmr.msra.gmra.mrb[0].mxu0 %v218_v1  ;;  %v283_v0 = vld [vmem:[%s1895_s28 + $0x208] sm:$0xff] }
  0x32   : > { %1103 = vmatmul.mubr.f32.vlgmr.msra.gmra.mrb[0].mxu1 %v218_v1  ;;  %1591 = vmatprep.mubr.msk.f32.mxu0 %vm367_vm0, %v221_v2  ;;  %v282_v1 = vld [vmem:[%s1895_s28 + $0x200] sm:$0xff] }
  0x33   : > { %1656 = vmatprep.mubr.msk.f32.mxu1 %vm367_vm0, %v221_v2  ;;  %v285_v2 = vld [vmem:[%s1895_s28 + $0x218] sm:$0xff] }
  0x35   : > { %634 = vmatmul.mubr.f32.gmra.mrb[2].mxu0 %v220_v3 }
  0x36   : > { %1108 = vmatmul.mubr.f32.gmra.mrb[2].mxu1 %v220_v3  ;;  %1592 = vmatprep.mubr.msk.f32.mxu0 %vm367_vm0, %v223_v4  ;;  %v284_v3 = vld [vmem:[%s1895_s28 + $0x210] sm:$0xff] }
  0x37   : > { %1657 = vmatprep.mubr.msk.f32.mxu1 %vm367_vm0, %v223_v4  ;;  %v287_v4 = vld [vmem:[%s1895_s28 + $0x228] sm:$0xff] }
  0x39   : > { %639 = vmatmul.mubr.f32.gmra.mrb[4].mxu0 %v222_v5 }
  0x3a   : > { %1113 = vmatmul.mubr.f32.gmra.mrb[4].mxu1 %v222_v5  ;;  %1593 = vmatprep.mubr.msk.f32.mxu0 %vm367_vm0, %v225_v6  ;;  %v286_v5 = vld [vmem:[%s1895_s28 + $0x220] sm:$0xff] }
  0x3b   : > { %1658 = vmatprep.mubr.msk.f32.mxu1 %vm367_vm0, %v225_v6  ;;  %v289_v6 = vld [vmem:[%s1895_s28 + $0x238] sm:$0xff] }
  0x3d   : > { %644 = vmatmul.mubr.f32.gmra.mrb[6].mxu0 %v224_v7 }
  0x3e   : > { %1118 = vmatmul.mubr.f32.gmra.mrb[6].mxu1 %v224_v7  ;;  %1594 = vmatprep.mubr.msk.f32.mxu0 %vm367_vm0, %v227_v8  ;;  %v288_v7 = vld [vmem:[%s1895_s28 + $0x230] sm:$0xff] }
  0x3f   : > { %1659 = vmatprep.mubr.msk.f32.mxu1 %vm367_vm0, %v227_v8  ;;  %v291_v8 = vld [vmem:[%s1895_s28 + $0x248] sm:$0xff] }
  0x41   : > { %649 = vmatmul.mubr.f32.gmra.mrb[8].mxu0 %v226_v9 }
  0x42   : > { %1123 = vmatmul.mubr.f32.gmra.mrb[8].mxu1 %v226_v9  ;;  %1595 = vmatprep.mubr.msk.f32.mxu0 %vm367_vm0, %v229_v10  ;;  %v290_v9 = vld [vmem:[%s1895_s28 + $0x240] sm:$0xff] }
  0x43   : > { %1660 = vmatprep.mubr.msk.f32.mxu1 %vm367_vm0, %v229_v10  ;;  %v293_v10 = vld [vmem:[%s1895_s28 + $0x258] sm:$0xff] }
  0x45   : > { %654 = vmatmul.mubr.f32.gmra.mrb[10].mxu0 %v228_v11 }
  0x46   : > { %1128 = vmatmul.mubr.f32.gmra.mrb[10].mxu1 %v228_v11  ;;  %1596 = vmatprep.mubr.msk.f32.mxu0 %vm367_vm0, %v231_v12  ;;  %v292_v11 = vld [vmem:[%s1895_s28 + $0x250] sm:$0xff] }
  0x47   : > { %1661 = vmatprep.mubr.msk.f32.mxu1 %vm367_vm0, %v231_v12  ;;  %v295_v12 = vld [vmem:[%s1895_s28 + $0x268] sm:$0xff] }
  0x49   : > { %659 = vmatmul.mubr.f32.gmra.mrb[12].mxu0 %v230_v13 }
  0x4a   : > { %1133 = vmatmul.mubr.f32.gmra.mrb[12].mxu1 %v230_v13  ;;  %1597 = vmatprep.mubr.msk.f32.mxu0 %vm367_vm0, %v233_v14  ;;  %v294_v13 = vld [vmem:[%s1895_s28 + $0x260] sm:$0xff] }
  0x4b   : > { %1662 = vmatprep.mubr.msk.f32.mxu1 %vm367_vm0, %v233_v14  ;;  %v297_v14 = vld [vmem:[%s1895_s28 + $0x278] sm:$0xff] }
  0x4d   : > { %664 = vmatmul.mubr.f32.gmra.mrb[14].mxu0 %v232_v15 }
  0x4e   : > { %1138 = vmatmul.mubr.f32.gmra.mrb[14].mxu1 %v232_v15  ;;  %1598 = vmatprep.mubr.msk.f32.mxu0 %vm367_vm0, %v235_v16  ;;  %v296_v15 = vld [vmem:[%s1895_s28 + $0x270] sm:$0xff] }
  0x4f   : > { %1663 = vmatprep.mubr.msk.f32.mxu1 %vm367_vm0, %v235_v16  ;;  %v299_v16 = vld [vmem:[%s1895_s28 + $0x288] sm:$0xff] }
  0x51   : > { %669 = vmatmul.mubr.f32.gmra.mrb[16].mxu0 %v234_v17 }
  0x52   : > { %1143 = vmatmul.mubr.f32.gmra.mrb[16].mxu1 %v234_v17  ;;  %1599 = vmatprep.mubr.msk.f32.mxu0 %vm367_vm0, %v237_v18  ;;  %v298_v17 = vld [vmem:[%s1895_s28 + $0x280] sm:$0xff] }
  0x53   : > { %1664 = vmatprep.mubr.msk.f32.mxu1 %vm367_vm0, %v237_v18  ;;  %v301_v18 = vld [vmem:[%s1895_s28 + $0x298] sm:$0xff] }
  0x55   : > { %674 = vmatmul.mubr.f32.gmra.mrb[18].mxu0 %v236_v19 }
  0x56   : > { %1148 = vmatmul.mubr.f32.gmra.mrb[18].mxu1 %v236_v19  ;;  %1600 = vmatprep.mubr.msk.f32.mxu0 %vm367_vm0, %v239_v20  ;;  %v300_v19 = vld [vmem:[%s1895_s28 + $0x290] sm:$0xff] }
  0x57   : > { %1665 = vmatprep.mubr.msk.f32.mxu1 %vm367_vm0, %v239_v20  ;;  %v303_v20 = vld [vmem:[%s1895_s28 + $0x2a8] sm:$0xff] }
  0x59   : > { %679 = vmatmul.mubr.f32.gmra.mrb[20].mxu0 %v238_v21 }
  0x5a   : > { %1153 = vmatmul.mubr.f32.gmra.mrb[20].mxu1 %v238_v21  ;;  %1601 = vmatprep.mubr.msk.f32.mxu0 %vm367_vm0, %v241_v22  ;;  %v302_v21 = vld [vmem:[%s1895_s28 + $0x2a0] sm:$0xff] }
  0x5b   : > { %1666 = vmatprep.mubr.msk.f32.mxu1 %vm367_vm0, %v241_v22  ;;  %v305_v22 = vld [vmem:[%s1895_s28 + $0x2b8] sm:$0xff] }
  0x5d   : > { %684 = vmatmul.mubr.f32.gmra.mrb[22].mxu0 %v240_v23 }
  0x5e   : > { %1158 = vmatmul.mubr.f32.gmra.mrb[22].mxu1 %v240_v23  ;;  %1602 = vmatprep.mubr.msk.f32.mxu0 %vm367_vm0, %v243_v24  ;;  %v304_v23 = vld [vmem:[%s1895_s28 + $0x2b0] sm:$0xff] }
  0x5f   : > { %1667 = vmatprep.mubr.msk.f32.mxu1 %vm367_vm0, %v243_v24  ;;  %v307_v24 = vld [vmem:[%s1895_s28 + $0x2c8] sm:$0xff] }
  0x61   : > { %689 = vmatmul.mubr.f32.gmra.mrb[24].mxu0 %v242_v25 }
  0x62   : > { %1163 = vmatmul.mubr.f32.gmra.mrb[24].mxu1 %v242_v25  ;;  %1603 = vmatprep.mubr.msk.f32.mxu0 %vm367_vm0, %v245_v26  ;;  %v306_v25 = vld [vmem:[%s1895_s28 + $0x2c0] sm:$0xff] }
  0x63   : > { %1668 = vmatprep.mubr.msk.f32.mxu1 %vm367_vm0, %v245_v26  ;;  %v309_v26 = vld [vmem:[%s1895_s28 + $0x2d8] sm:$0xff] }
  0x65   : > { %694 = vmatmul.mubr.f32.gmra.mrb[26].mxu0 %v244_v27 }
  0x66   : > { %1168 = vmatmul.mubr.f32.gmra.mrb[26].mxu1 %v244_v27  ;;  %1604 = vmatprep.mubr.msk.f32.mxu0 %vm367_vm0, %v247_v28  ;;  %v308_v27 = vld [vmem:[%s1895_s28 + $0x2d0] sm:$0xff] }
  0x67   : > { %1669 = vmatprep.mubr.msk.f32.mxu1 %vm367_vm0, %v247_v28  ;;  %v311_v28 = vld [vmem:[%s1895_s28 + $0x2e8] sm:$0xff] }
  0x69   : > { %699 = vmatmul.mubr.f32.gmra.mrb[28].mxu0 %v246_v29 }
  0x6a   : > { %1173 = vmatmul.mubr.f32.gmra.mrb[28].mxu1 %v246_v29  ;;  %1605 = vmatprep.mubr.msk.f32.mxu0 %vm367_vm0, %v249_v30  ;;  %v310_v29 = vld [vmem:[%s1895_s28 + $0x2e0] sm:$0xff] }
  0x6b   : > { %1670 = vmatprep.mubr.msk.f32.mxu1 %vm367_vm0, %v249_v30  ;;  %v313_v30 = vld [vmem:[%s1895_s28 + $0x2f8] sm:$0xff] }
  0x6d   : > { %704 = vmatmul.mubr.f32.gmra.mrb[30].mxu0 %v248_v31 }
  0x6e   : > { %1178 = vmatmul.mubr.f32.gmra.mrb[30].mxu1 %v248_v31  ;;  %1606 = vmatprep.mubr.msk.f32.mxu0 %vm367_vm0, %v251_v32  ;;  %v312_v31 = vld [vmem:[%s1895_s28 + $0x2f0] sm:$0xff] }
  0x6f   : > { %1671 = vmatprep.mubr.msk.f32.mxu1 %vm367_vm0, %v251_v32  ;;  %v315_v32 = vld [vmem:[%s1895_s28 + $0x308] sm:$0xff] }
  0x71   : > { %709 = vmatmul.mubr.f32.gmra.mrb[32].mxu0 %v250_v33 }
  0x72   : > { %1183 = vmatmul.mubr.f32.gmra.mrb[32].mxu1 %v250_v33  ;;  %1607 = vmatprep.mubr.msk.f32.mxu0 %vm367_vm0, %v253_v34  ;;  %v314_v33 = vld [vmem:[%s1895_s28 + $0x300] sm:$0xff] }
  0x73   : > { %1672 = vmatprep.mubr.msk.f32.mxu1 %vm367_vm0, %v253_v34  ;;  %v317_v34 = vld [vmem:[%s1895_s28 + $0x318] sm:$0xff] }
  0x75   : > { %714 = vmatmul.mubr.f32.gmra.mrb[34].mxu0 %v252_v35 }
  0x76   : > { %1188 = vmatmul.mubr.f32.gmra.mrb[34].mxu1 %v252_v35  ;;  %1608 = vmatprep.mubr.msk.f32.mxu0 %vm367_vm0, %v255_v36  ;;  %v316_v35 = vld [vmem:[%s1895_s28 + $0x310] sm:$0xff] }
  0x77   : > { %1673 = vmatprep.mubr.msk.f32.mxu1 %vm367_vm0, %v255_v36  ;;  %v319_v36 = vld [vmem:[%s1895_s28 + $0x328] sm:$0xff] }
  0x79   : > { %719 = vmatmul.mubr.f32.gmra.mrb[36].mxu0 %v254_v37 }
  0x7a   : > { %1193 = vmatmul.mubr.f32.gmra.mrb[36].mxu1 %v254_v37  ;;  %1609 = vmatprep.mubr.msk.f32.mxu0 %vm367_vm0, %v257_v38  ;;  %v318_v37 = vld [vmem:[%s1895_s28 + $0x320] sm:$0xff] }
  0x7b   : > { %1674 = vmatprep.mubr.msk.f32.mxu1 %vm367_vm0, %v257_v38  ;;  %v321_v38 = vld [vmem:[%s1895_s28 + $0x338] sm:$0xff] }
  0x7d   : > { %724 = vmatmul.mubr.f32.gmra.mrb[38].mxu0 %v256_v39 }
  0x7e   : > { %1198 = vmatmul.mubr.f32.gmra.mrb[38].mxu1 %v256_v39  ;;  %1610 = vmatprep.mubr.msk.f32.mxu0 %vm367_vm0, %v259_v40  ;;  %v320_v39 = vld [vmem:[%s1895_s28 + $0x330] sm:$0xff] }
  0x7f   : > { %1675 = vmatprep.mubr.msk.f32.mxu1 %vm367_vm0, %v259_v40  ;;  %v323_v40 = vld [vmem:[%s1895_s28 + $0x348] sm:$0xff] }
  0x81   : > { %729 = vmatmul.mubr.f32.gmra.mrb[40].mxu0 %v258_v41 }
  0x82   : > { %1203 = vmatmul.mubr.f32.gmra.mrb[40].mxu1 %v258_v41  ;;  %1611 = vmatprep.mubr.msk.f32.mxu0 %vm367_vm0, %v261_v42  ;;  %v322_v41 = vld [vmem:[%s1895_s28 + $0x340] sm:$0xff] }
  0x83   : > { %1676 = vmatprep.mubr.msk.f32.mxu1 %vm367_vm0, %v261_v42  ;;  %v325_v42 = vld [vmem:[%s1895_s28 + $0x358] sm:$0xff] }
  0x85   : > { %734 = vmatmul.mubr.f32.gmra.mrb[42].mxu0 %v260_v43 }
  0x86   : > { %1208 = vmatmul.mubr.f32.gmra.mrb[42].mxu1 %v260_v43  ;;  %1612 = vmatprep.mubr.msk.f32.mxu0 %vm367_vm0, %v263_v44  ;;  %v324_v43 = vld [vmem:[%s1895_s28 + $0x350] sm:$0xff] }
  0x87   : > { %1677 = vmatprep.mubr.msk.f32.mxu1 %vm367_vm0, %v263_v44  ;;  %v327_v44 = vld [vmem:[%s1895_s28 + $0x368] sm:$0xff] }
  0x89   : > { %739 = vmatmul.mubr.f32.gmra.mrb[44].mxu0 %v262_v45 }
  0x8a   : > { %1213 = vmatmul.mubr.f32.gmra.mrb[44].mxu1 %v262_v45  ;;  %1613 = vmatprep.mubr.msk.f32.mxu0 %vm367_vm0, %v265_v46 }
  0x8b   : > { %1678 = vmatprep.mubr.msk.f32.mxu1 %vm367_vm0, %v265_v46 }
  0x8d   : > { %744 = vmatmul.mubr.f32.gmra.mrb[46].mxu0 %v264_v47 }
  0x8e   : > { %1218 = vmatmul.mubr.f32.gmra.mrb[46].mxu1 %v264_v47  ;;  %1614 = vmatprep.mubr.msk.f32.mxu0 %vm367_vm0, %v267_v48 }
  0x8f   : > { %1679 = vmatprep.mubr.msk.f32.mxu1 %vm367_vm0, %v267_v48 }
  0x91   : > { %749 = vmatmul.mubr.f32.gmra.mrb[48].mxu0 %v266_v49 }
  0x92   : > { %1223 = vmatmul.mubr.f32.gmra.mrb[48].mxu1 %v266_v49  ;;  %1615 = vmatprep.mubr.msk.f32.mxu0 %vm367_vm0, %v269_v50  ;;  %v326_v49 = vld [vmem:[%s1895_s28 + $0x360] sm:$0xff] }
  0x93   : > { %1680 = vmatprep.mubr.msk.f32.mxu1 %vm367_vm0, %v269_v50  ;;  %v329_v50 = vld [vmem:[%s1895_s28 + $0x378] sm:$0xff] }
  0x95   : > { %754 = vmatmul.mubr.f32.gmra.mrb[50].mxu0 %v268_v51 }
  0x96   : > { %1228 = vmatmul.mubr.f32.gmra.mrb[50].mxu1 %v268_v51  ;;  %1616 = vmatprep.mubr.msk.f32.mxu0 %vm367_vm0, %v271_v52 }
  0x97   : > { %1681 = vmatprep.mubr.msk.f32.mxu1 %vm367_vm0, %v271_v52 }
  0x99   : > { %759 = vmatmul.mubr.f32.gmra.mrb[52].mxu0 %v270_v53 }
  0x9a   : > { %1233 = vmatmul.mubr.f32.gmra.mrb[52].mxu1 %v270_v53  ;;  %1617 = vmatprep.mubr.msk.f32.mxu0 %vm367_vm0, %v273_v54 }
  0x9b   : > { %1682 = vmatprep.mubr.msk.f32.mxu1 %vm367_vm0, %v273_v54 }
  0x9d   : > { %764 = vmatmul.mubr.f32.gmra.mrb[54].mxu0 %v272_v55 }
  0x9e   : > { %1238 = vmatmul.mubr.f32.gmra.mrb[54].mxu1 %v272_v55  ;;  %1618 = vmatprep.mubr.msk.f32.mxu0 %vm367_vm0, %v275_v56  ;;  %v328_v55 = vld [vmem:[%s1895_s28 + $0x370] sm:$0xff] }
  0x9f   : > { %1683 = vmatprep.mubr.msk.f32.mxu1 %vm367_vm0, %v275_v56  ;;  %v331_v56 = vld [vmem:[%s1895_s28 + $0x388] sm:$0xff] }
  0xa1   : > { %769 = vmatmul.mubr.f32.gmra.mrb[56].mxu0 %v274_v57 }
  0xa2   : > { %1243 = vmatmul.mubr.f32.gmra.mrb[56].mxu1 %v274_v57  ;;  %1619 = vmatprep.mubr.msk.f32.mxu0 %vm367_vm0, %v277_v58 }
  0xa3   : > { %1684 = vmatprep.mubr.msk.f32.mxu1 %vm367_vm0, %v277_v58 }
  0xa5   : > { %774 = vmatmul.mubr.f32.gmra.mrb[58].mxu0 %v276_v59 }
  0xa6   : > { %1248 = vmatmul.mubr.f32.gmra.mrb[58].mxu1 %v276_v59  ;;  %1620 = vmatprep.mubr.msk.f32.mxu0 %vm367_vm0, %v279_v60 }
  0xa7   : > { %1685 = vmatprep.mubr.msk.f32.mxu1 %vm367_vm0, %v279_v60 }
  0xa9   : > { %779 = vmatmul.mubr.f32.gmra.mrb[60].mxu0 %v278_v61 }
  0xaa   : > { %1253 = vmatmul.mubr.f32.gmra.mrb[60].mxu1 %v278_v61  ;;  %1621 = vmatprep.mubr.msk.f32.mxu0 %vm367_vm0, %v281_v62  ;;  %v330_v61 = vld [vmem:[%s1895_s28 + $0x380] sm:$0xff] }
  0xab   : > { %1686 = vmatprep.mubr.msk.f32.mxu1 %vm367_vm0, %v281_v62  ;;  %v333_v62 = vld [vmem:[%s1895_s28 + $0x398] sm:$0xff] }
  0xad   : > { %784 = vmatmul.mubr.f32.gmra.mrb[62].mxu0 %v280_v63 }
  0xae   : > { %1258 = vmatmul.mubr.f32.gmra.mrb[62].mxu1 %v280_v63  ;;  %1622 = vmatprep.mubr.msk.f32.mxu0 %vm367_vm0, %v283_v0 }
  0xaf   : > { %1687 = vmatprep.mubr.msk.f32.mxu1 %vm367_vm0, %v283_v0 }
  0xb1   : > { %789 = vmatmul.mubr.f32.gmra.mrb[64].mxu0 %v282_v1 }
  0xb2   : > { %1263 = vmatmul.mubr.f32.gmra.mrb[64].mxu1 %v282_v1  ;;  %1623 = vmatprep.mubr.msk.f32.mxu0 %vm367_vm0, %v285_v2 }
  0xb3   : > { %1688 = vmatprep.mubr.msk.f32.mxu1 %vm367_vm0, %v285_v2 }
  0xb5   : > { %794 = vmatmul.mubr.f32.gmra.mrb[66].mxu0 %v284_v3 }
  0xb6   : > { %1268 = vmatmul.mubr.f32.gmra.mrb[66].mxu1 %v284_v3  ;;  %1624 = vmatprep.mubr.msk.f32.mxu0 %vm367_vm0, %v287_v4  ;;  %v332_v3 = vld [vmem:[%s1895_s28 + $0x390] sm:$0xff] }
  0xb7   : > { %1689 = vmatprep.mubr.msk.f32.mxu1 %vm367_vm0, %v287_v4  ;;  %v335_v4 = vld [vmem:[%s1895_s28 + $0x3a8] sm:$0xff] }
  0xb9   : > { %799 = vmatmul.mubr.f32.gmra.mrb[68].mxu0 %v286_v5 }
  0xba   : > { %1273 = vmatmul.mubr.f32.gmra.mrb[68].mxu1 %v286_v5  ;;  %1625 = vmatprep.mubr.msk.f32.mxu0 %vm367_vm0, %v289_v6 }
  0xbb   : > { %1690 = vmatprep.mubr.msk.f32.mxu1 %vm367_vm0, %v289_v6 }
  0xbd   : > { %804 = vmatmul.mubr.f32.gmra.mrb[70].mxu0 %v288_v7 }
  0xbe   : > { %1278 = vmatmul.mubr.f32.gmra.mrb[70].mxu1 %v288_v7  ;;  %1626 = vmatprep.mubr.msk.f32.mxu0 %vm367_vm0, %v291_v8 }
  0xbf   : > { %1691 = vmatprep.mubr.msk.f32.mxu1 %vm367_vm0, %v291_v8 }
  0xc1   : > { %809 = vmatmul.mubr.f32.gmra.mrb[72].mxu0 %v290_v9 }
  0xc2   : > { %1283 = vmatmul.mubr.f32.gmra.mrb[72].mxu1 %v290_v9  ;;  %1627 = vmatprep.mubr.msk.f32.mxu0 %vm367_vm0, %v293_v10  ;;  %v334_v9 = vld [vmem:[%s1895_s28 + $0x3a0] sm:$0xff] }
  0xc3   : > { %1692 = vmatprep.mubr.msk.f32.mxu1 %vm367_vm0, %v293_v10  ;;  %v337_v10 = vld [vmem:[%s1895_s28 + $0x3b8] sm:$0xff] }
  0xc5   : > { %814 = vmatmul.mubr.f32.gmra.mrb[74].mxu0 %v292_v11 }
  0xc6   : > { %1288 = vmatmul.mubr.f32.gmra.mrb[74].mxu1 %v292_v11  ;;  %1628 = vmatprep.mubr.msk.f32.mxu0 %vm367_vm0, %v295_v12 }
  0xc7   : > { %1693 = vmatprep.mubr.msk.f32.mxu1 %vm367_vm0, %v295_v12 }
  0xc9   : > { %819 = vmatmul.mubr.f32.gmra.mrb[76].mxu0 %v294_v13 }
  0xca   : > { %1293 = vmatmul.mubr.f32.gmra.mrb[76].mxu1 %v294_v13  ;;  %1629 = vmatprep.mubr.msk.f32.mxu0 %vm367_vm0, %v297_v14 }
  0xcb   : > { %1694 = vmatprep.mubr.msk.f32.mxu1 %vm367_vm0, %v297_v14 }
  0xcd   : > { %824 = vmatmul.mubr.f32.gmra.mrb[78].mxu0 %v296_v15 }
  0xce   : > { %1298 = vmatmul.mubr.f32.gmra.mrb[78].mxu1 %v296_v15  ;;  %1630 = vmatprep.mubr.msk.f32.mxu0 %vm367_vm0, %v299_v16  ;;  %v336_v15 = vld [vmem:[%s1895_s28 + $0x3b0] sm:$0xff] }
  0xcf   : > { %1695 = vmatprep.mubr.msk.f32.mxu1 %vm367_vm0, %v299_v16  ;;  %v339_v16 = vld [vmem:[%s1895_s28 + $0x3c8] sm:$0xff] }
  0xd1   : > { %829 = vmatmul.mubr.f32.gmra.mrb[80].mxu0 %v298_v17 }
  0xd2   : > { %1303 = vmatmul.mubr.f32.gmra.mrb[80].mxu1 %v298_v17  ;;  %1631 = vmatprep.mubr.msk.f32.mxu0 %vm367_vm0, %v301_v18 }
  0xd3   : > { %1696 = vmatprep.mubr.msk.f32.mxu1 %vm367_vm0, %v301_v18 }
  0xd5   : > { %834 = vmatmul.mubr.f32.gmra.mrb[82].mxu0 %v300_v19 }
  0xd6   : > { %1308 = vmatmul.mubr.f32.gmra.mrb[82].mxu1 %v300_v19  ;;  %1632 = vmatprep.mubr.msk.f32.mxu0 %vm367_vm0, %v303_v20 }
  0xd7   : > { %1697 = vmatprep.mubr.msk.f32.mxu1 %vm367_vm0, %v303_v20 }
  0xd9   : > { %839 = vmatmul.mubr.f32.gmra.mrb[84].mxu0 %v302_v21 }
  0xda   : > { %1313 = vmatmul.mubr.f32.gmra.mrb[84].mxu1 %v302_v21  ;;  %1633 = vmatprep.mubr.msk.f32.mxu0 %vm367_vm0, %v305_v22  ;;  %v338_v21 = vld [vmem:[%s1895_s28 + $0x3c0] sm:$0xff] }
  0xdb   : > { %1698 = vmatprep.mubr.msk.f32.mxu1 %vm367_vm0, %v305_v22  ;;  %v341_v22 = vld [vmem:[%s1895_s28 + $0x3d8] sm:$0xff] }
  0xdd   : > { %844 = vmatmul.mubr.f32.gmra.mrb[86].mxu0 %v304_v23 }
  0xde   : > { %1318 = vmatmul.mubr.f32.gmra.mrb[86].mxu1 %v304_v23  ;;  %1634 = vmatprep.mubr.msk.f32.mxu0 %vm367_vm0, %v307_v24 }
  0xdf   : > { %1699 = vmatprep.mubr.msk.f32.mxu1 %vm367_vm0, %v307_v24 }
  0xe1   : > { %849 = vmatmul.mubr.f32.gmra.mrb[88].mxu0 %v306_v25 }
  0xe2   : > { %1323 = vmatmul.mubr.f32.gmra.mrb[88].mxu1 %v306_v25  ;;  %1635 = vmatprep.mubr.msk.f32.mxu0 %vm367_vm0, %v309_v26 }
  0xe3   : > { %1700 = vmatprep.mubr.msk.f32.mxu1 %vm367_vm0, %v309_v26 }
  0xe5   : > { %854 = vmatmul.mubr.f32.gmra.mrb[90].mxu0 %v308_v27 }
  0xe6   : > { %1328 = vmatmul.mubr.f32.gmra.mrb[90].mxu1 %v308_v27  ;;  %1636 = vmatprep.mubr.msk.f32.mxu0 %vm367_vm0, %v311_v28  ;;  %v340_v27 = vld [vmem:[%s1895_s28 + $0x3d0] sm:$0xff] }
  0xe7   : > { %1701 = vmatprep.mubr.msk.f32.mxu1 %vm367_vm0, %v311_v28  ;;  %v343_v28 = vld [vmem:[%s1895_s28 + $0x3e8] sm:$0xff] }
  0xe9   : > { %859 = vmatmul.mubr.f32.gmra.mrb[92].mxu0 %v310_v29 }
  0xea   : > { %1333 = vmatmul.mubr.f32.gmra.mrb[92].mxu1 %v310_v29  ;;  %1637 = vmatprep.mubr.msk.f32.mxu0 %vm367_vm0, %v313_v30 }
  0xeb   : > { %1702 = vmatprep.mubr.msk.f32.mxu1 %vm367_vm0, %v313_v30 }
  0xed   : > { %864 = vmatmul.mubr.f32.gmra.mrb[94].mxu0 %v312_v31 }
  0xee   : > { %1338 = vmatmul.mubr.f32.gmra.mrb[94].mxu1 %v312_v31  ;;  %1638 = vmatprep.mubr.msk.f32.mxu0 %vm367_vm0, %v315_v32 }
  0xef   : > { %1703 = vmatprep.mubr.msk.f32.mxu1 %vm367_vm0, %v315_v32 }
  0xf1   : > { %869 = vmatmul.mubr.f32.gmra.mrb[96].mxu0 %v314_v33 }
  0xf2   : > { %1343 = vmatmul.mubr.f32.gmra.mrb[96].mxu1 %v314_v33  ;;  %1639 = vmatprep.mubr.msk.f32.mxu0 %vm367_vm0, %v317_v34  ;;  %v342_v33 = vld [vmem:[%s1895_s28 + $0x3e0] sm:$0xff] }
  0xf3   : > { %1704 = vmatprep.mubr.msk.f32.mxu1 %vm367_vm0, %v317_v34  ;;  %v345_v34 = vld [vmem:[%s1895_s28 + $0x3f8] sm:$0xff] }
  0xf5   : > { %874 = vmatmul.mubr.f32.gmra.mrb[98].mxu0 %v316_v35 }
  0xf6   : > { %1348 = vmatmul.mubr.f32.gmra.mrb[98].mxu1 %v316_v35  ;;  %1640 = vmatprep.mubr.msk.f32.mxu0 %vm367_vm0, %v319_v36 }
  0xf7   : > { %1705 = vmatprep.mubr.msk.f32.mxu1 %vm367_vm0, %v319_v36 }
  0xf9   : > { %879 = vmatmul.mubr.f32.gmra.mrb[100].mxu0 %v318_v37 }
  0xfa   : > { %1353 = vmatmul.mubr.f32.gmra.mrb[100].mxu1 %v318_v37  ;;  %1641 = vmatprep.mubr.msk.f32.mxu0 %vm367_vm0, %v321_v38 }
  0xfb   : > { %1706 = vmatprep.mubr.msk.f32.mxu1 %vm367_vm0, %v321_v38 }
  0xfd   : > { %884 = vmatmul.mubr.f32.gmra.mrb[102].mxu0 %v320_v39 }
  0xfe   : > { %1358 = vmatmul.mubr.f32.gmra.mrb[102].mxu1 %v320_v39  ;;  %1642 = vmatprep.mubr.msk.f32.mxu0 %vm367_vm0, %v323_v40  ;;  %v344_v39 = vld [vmem:[%s1895_s28 + $0x3f0] sm:$0xff] }
  0xff   : > { %1707 = vmatprep.mubr.msk.f32.mxu1 %vm367_vm0, %v323_v40 }
 0x101   : > { %889 = vmatmul.mubr.f32.gmra.mrb[104].mxu0 %v322_v41 }
 0x102   : > { %1363 = vmatmul.mubr.f32.gmra.mrb[104].mxu1 %v322_v41  ;;  %1643 = vmatprep.mubr.msk.f32.mxu0 %vm367_vm0, %v325_v42 }
 0x103   : > { %1708 = vmatprep.mubr.msk.f32.mxu1 %vm367_vm0, %v325_v42 }
 0x104   : > { %v630_v45 = vpop.f32.mrb[0].mxu0 }
 0x105   : > { %950 = vst.msk [vmem:[%s2206_s13] sm:$0xff] %vm949_vm2, %v630_v45  ;;  %v1104_v46 = vpop.f32.mrb[0].mxu1  ;;  %v632_v47 = vpop.f32.mrb[1].mxu0  ;;  %894 = vmatmul.mubr.f32.gmra.mrb[106].mxu0 %v324_v43 }
 0x106   : > { %1423 = vst.msk [vmem:[%s2213_s17] sm:$0xff] %vm949_vm2, %v1104_v46  ;;  %v1106_v48 = vpop.f32.mrb[1].mxu1  ;;  %1368 = vmatmul.mubr.f32.gmra.mrb[106].mxu1 %v324_v43  ;;  %1644 = vmatprep.mubr.msk.f32.mxu0 %vm367_vm0, %v327_v44 }
 0x107   : > { %1709 = vmatprep.mubr.msk.f32.mxu1 %vm367_vm0, %v327_v44 }
 0x108   : > { %v635_v51 = vpop.f32.mrb[2].mxu0 }
 0x109   : > { %951 = vst.msk [vmem:[%s2206_s13 + $0x8] sm:$0xff] %vm949_vm2, %v635_v51  ;;  %v1109_v52 = vpop.f32.mrb[2].mxu1  ;;  %v637_v53 = vpop.f32.mrb[3].mxu0  ;;  %899 = vmatmul.mubr.f32.gmra.mrb[108].mxu0 %v326_v49 }
 0x10a   : > { %1424 = vst.msk [vmem:[%s2213_s17 + $0x8] sm:$0xff] %vm949_vm2, %v1109_v52  ;;  %v1111_v54 = vpop.f32.mrb[3].mxu1  ;;  %1373 = vmatmul.mubr.f32.gmra.mrb[108].mxu1 %v326_v49  ;;  %1645 = vmatprep.mubr.msk.f32.mxu0 %vm367_vm0, %v329_v50 }
 0x10b   : > { %1710 = vmatprep.mubr.msk.f32.mxu1 %vm367_vm0, %v329_v50 }
 0x10c   : > { %v640_v57 = vpop.f32.mrb[4].mxu0 }
 0x10d   : > { %952 = vst.msk [vmem:[%s2206_s13 + $0x10] sm:$0xff] %vm949_vm2, %v640_v57  ;;  %v1114_v58 = vpop.f32.mrb[4].mxu1  ;;  %v642_v59 = vpop.f32.mrb[5].mxu0  ;;  %904 = vmatmul.mubr.f32.gmra.mrb[110].mxu0 %v328_v55 }
 0x10e   : > { %1425 = vst.msk [vmem:[%s2213_s17 + $0x10] sm:$0xff] %vm949_vm2, %v1114_v58  ;;  %v1116_v60 = vpop.f32.mrb[5].mxu1  ;;  %1378 = vmatmul.mubr.f32.gmra.mrb[110].mxu1 %v328_v55  ;;  %1646 = vmatprep.mubr.msk.f32.mxu0 %vm367_vm0, %v331_v56 }
 0x10f   : > { %1711 = vmatprep.mubr.msk.f32.mxu1 %vm367_vm0, %v331_v56 }
 0x110   : > { %v645_v63 = vpop.f32.mrb[6].mxu0 }
 0x111   : > { %953 = vst.msk [vmem:[%s2206_s13 + $0x18] sm:$0xff] %vm949_vm2, %v645_v63  ;;  %v1119_v0 = vpop.f32.mrb[6].mxu1  ;;  %v647_v1 = vpop.f32.mrb[7].mxu0  ;;  %909 = vmatmul.mubr.f32.gmra.mrb[112].mxu0 %v330_v61 }
 0x112   : > { %1426 = vst.msk [vmem:[%s2213_s17 + $0x18] sm:$0xff] %vm949_vm2, %v1119_v0  ;;  %v1121_v2 = vpop.f32.mrb[7].mxu1  ;;  %1383 = vmatmul.mubr.f32.gmra.mrb[112].mxu1 %v330_v61  ;;  %1647 = vmatprep.mubr.msk.f32.mxu0 %vm367_vm0, %v333_v62 }
 0x113   : > { %1712 = vmatprep.mubr.msk.f32.mxu1 %vm367_vm0, %v333_v62 }
 0x114   : > { %v650_v5 = vpop.f32.mrb[8].mxu0 }
 0x115   : > { %954 = vst.msk [vmem:[%s2206_s13 + $0x20] sm:$0xff] %vm949_vm2, %v650_v5  ;;  %v1124_v6 = vpop.f32.mrb[8].mxu1  ;;  %v652_v7 = vpop.f32.mrb[9].mxu0  ;;  %914 = vmatmul.mubr.f32.gmra.mrb[114].mxu0 %v332_v3 }
 0x116   : > { %1427 = vst.msk [vmem:[%s2213_s17 + $0x20] sm:$0xff] %vm949_vm2, %v1124_v6  ;;  %v1126_v8 = vpop.f32.mrb[9].mxu1  ;;  %1388 = vmatmul.mubr.f32.gmra.mrb[114].mxu1 %v332_v3  ;;  %1648 = vmatprep.mubr.msk.f32.mxu0 %vm367_vm0, %v335_v4 }
 0x117   : > { %1713 = vmatprep.mubr.msk.f32.mxu1 %vm367_vm0, %v335_v4 }
 0x118   : > { %v655_v11 = vpop.f32.mrb[10].mxu0 }
 0x119   : > { %955 = vst.msk [vmem:[%s2206_s13 + $0x28] sm:$0xff] %vm949_vm2, %v655_v11  ;;  %v1129_v12 = vpop.f32.mrb[10].mxu1  ;;  %v657_v13 = vpop.f32.mrb[11].mxu0  ;;  %919 = vmatmul.mubr.f32.gmra.mrb[116].mxu0 %v334_v9 }
 0x11a   : > { %1428 = vst.msk [vmem:[%s2213_s17 + $0x28] sm:$0xff] %vm949_vm2, %v1129_v12  ;;  %v1131_v14 = vpop.f32.mrb[11].mxu1  ;;  %1393 = vmatmul.mubr.f32.gmra.mrb[116].mxu1 %v334_v9  ;;  %1649 = vmatprep.mubr.msk.f32.mxu0 %vm367_vm0, %v337_v10 }
 0x11b   : > { %1714 = vmatprep.mubr.msk.f32.mxu1 %vm367_vm0, %v337_v10 }
 0x11c   : > { %v660_v17 = vpop.f32.mrb[12].mxu0 }
 0x11d   : > { %956 = vst.msk [vmem:[%s2206_s13 + $0x30] sm:$0xff] %vm949_vm2, %v660_v17  ;;  %v1134_v18 = vpop.f32.mrb[12].mxu1  ;;  %v662_v19 = vpop.f32.mrb[13].mxu0  ;;  %924 = vmatmul.mubr.f32.gmra.mrb[118].mxu0 %v336_v15 }
 0x11e   : > { %1429 = vst.msk [vmem:[%s2213_s17 + $0x30] sm:$0xff] %vm949_vm2, %v1134_v18  ;;  %v1136_v20 = vpop.f32.mrb[13].mxu1  ;;  %1398 = vmatmul.mubr.f32.gmra.mrb[118].mxu1 %v336_v15  ;;  %1650 = vmatprep.mubr.msk.f32.mxu0 %vm367_vm0, %v339_v16 }
 0x11f   : > { %1715 = vmatprep.mubr.msk.f32.mxu1 %vm367_vm0, %v339_v16 }
 0x120   : > { %v665_v23 = vpop.f32.mrb[14].mxu0 }
 0x121   : > { %957 = vst.msk [vmem:[%s2206_s13 + $0x38] sm:$0xff] %vm949_vm2, %v665_v23  ;;  %v1139_v24 = vpop.f32.mrb[14].mxu1  ;;  %v667_v25 = vpop.f32.mrb[15].mxu0  ;;  %929 = vmatmul.mubr.f32.gmra.mrb[120].mxu0 %v338_v21 }
 0x122   : > { %1430 = vst.msk [vmem:[%s2213_s17 + $0x38] sm:$0xff] %vm949_vm2, %v1139_v24  ;;  %v1141_v26 = vpop.f32.mrb[15].mxu1  ;;  %1403 = vmatmul.mubr.f32.gmra.mrb[120].mxu1 %v338_v21  ;;  %1651 = vmatprep.mubr.msk.f32.mxu0 %vm367_vm0, %v341_v22 }
 0x123   : > { %1716 = vmatprep.mubr.msk.f32.mxu1 %vm367_vm0, %v341_v22 }
 0x124   : > { %v670_v29 = vpop.f32.mrb[16].mxu0 }
 0x125   : > { %958 = vst.msk [vmem:[%s2206_s13 + $0x40] sm:$0xff] %vm949_vm2, %v670_v29  ;;  %v1144_v30 = vpop.f32.mrb[16].mxu1  ;;  %v672_v31 = vpop.f32.mrb[17].mxu0  ;;  %934 = vmatmul.mubr.f32.gmra.mrb[122].mxu0 %v340_v27 }
 0x126   : > { %1431 = vst.msk [vmem:[%s2213_s17 + $0x40] sm:$0xff] %vm949_vm2, %v1144_v30  ;;  %v1146_v32 = vpop.f32.mrb[17].mxu1  ;;  %1408 = vmatmul.mubr.f32.gmra.mrb[122].mxu1 %v340_v27  ;;  %1652 = vmatprep.mubr.msk.f32.mxu0 %vm367_vm0, %v343_v28 }
 0x127   : > { %1717 = vmatprep.mubr.msk.f32.mxu1 %vm367_vm0, %v343_v28 }
 0x128   : > { %v675_v35 = vpop.f32.mrb[18].mxu0 }
 0x129   : > { %959 = vst.msk [vmem:[%s2206_s13 + $0x48] sm:$0xff] %vm949_vm2, %v675_v35  ;;  %v1149_v36 = vpop.f32.mrb[18].mxu1  ;;  %v677_v37 = vpop.f32.mrb[19].mxu0  ;;  %939 = vmatmul.mubr.f32.gmra.mrb[124].mxu0 %v342_v33 }
 0x12a   : > { %1432 = vst.msk [vmem:[%s2213_s17 + $0x48] sm:$0xff] %vm949_vm2, %v1149_v36  ;;  %v1151_v38 = vpop.f32.mrb[19].mxu1  ;;  %1413 = vmatmul.mubr.f32.gmra.mrb[124].mxu1 %v342_v33  ;;  %1653 = vmatprep.mubr.msk.f32.mxu0 %vm367_vm0, %v345_v34 }
 0x12b   : > { %1718 = vmatprep.mubr.msk.f32.mxu1 %vm367_vm0, %v345_v34 }
 0x12c   : > { %v680_v40 = vpop.f32.mrb[20].mxu0 }
 0x12d   : > { %960 = vst.msk [vmem:[%s2206_s13 + $0x50] sm:$0xff] %vm949_vm2, %v680_v40  ;;  %v1154_v41 = vpop.f32.mrb[20].mxu1  ;;  %v682_v42 = vpop.f32.mrb[21].mxu0  ;;  %944 = vmatmul.mubr.f32.gmra.mrb[126].mxu0 %v344_v39 }
 0x12e   : > { %1433 = vst.msk [vmem:[%s2213_s17 + $0x50] sm:$0xff] %vm949_vm2, %v1154_v41  ;;  %v1156_v43 = vpop.f32.mrb[21].mxu1  ;;  %1418 = vmatmul.mubr.f32.gmra.mrb[126].mxu1 %v344_v39 }
 0x130   : > { %v685_v44 = vpop.f32.mrb[22].mxu0 }
 0x131   : > { %961 = vst.msk [vmem:[%s2206_s13 + $0x58] sm:$0xff] %vm949_vm2, %v685_v44  ;;  %v1159_v45 = vpop.f32.mrb[22].mxu1  ;;  %v687_v46 = vpop.f32.mrb[23].mxu0 }
 0x132   : > { %1434 = vst.msk [vmem:[%s2213_s17 + $0x58] sm:$0xff] %vm949_vm2, %v1159_v45  ;;  %v1161_v47 = vpop.f32.mrb[23].mxu1 }
 0x134   : > { %v690_v48 = vpop.f32.mrb[24].mxu0 }
 0x135   : > { %962 = vst.msk [vmem:[%s2206_s13 + $0x60] sm:$0xff] %vm949_vm2, %v690_v48  ;;  %v1164_v49 = vpop.f32.mrb[24].mxu1  ;;  %v692_v50 = vpop.f32.mrb[25].mxu0 }
 0x136   : > { %1435 = vst.msk [vmem:[%s2213_s17 + $0x60] sm:$0xff] %vm949_vm2, %v1164_v49  ;;  %v1166_v51 = vpop.f32.mrb[25].mxu1 }
 0x138   : > { %v695_v52 = vpop.f32.mrb[26].mxu0 }
 0x139   : > { %963 = vst.msk [vmem:[%s2206_s13 + $0x68] sm:$0xff] %vm949_vm2, %v695_v52  ;;  %v1169_v53 = vpop.f32.mrb[26].mxu1  ;;  %v697_v54 = vpop.f32.mrb[27].mxu0 }
 0x13a   : > { %1436 = vst.msk [vmem:[%s2213_s17 + $0x68] sm:$0xff] %vm949_vm2, %v1169_v53  ;;  %v1171_v55 = vpop.f32.mrb[27].mxu1 }
 0x13c   : > { %v700_v56 = vpop.f32.mrb[28].mxu0 }
 0x13d   : > { %964 = vst.msk [vmem:[%s2206_s13 + $0x70] sm:$0xff] %vm949_vm2, %v700_v56  ;;  %v1174_v57 = vpop.f32.mrb[28].mxu1  ;;  %v702_v58 = vpop.f32.mrb[29].mxu0 }
 0x13e   : > { %1437 = vst.msk [vmem:[%s2213_s17 + $0x70] sm:$0xff] %vm949_vm2, %v1174_v57  ;;  %v1176_v59 = vpop.f32.mrb[29].mxu1 }
 0x140   : > { %v705_v60 = vpop.f32.mrb[30].mxu0 }
 0x141   : > { %965 = vst.msk [vmem:[%s2206_s13 + $0x78] sm:$0xff] %vm949_vm2, %v705_v60  ;;  %v1179_v61 = vpop.f32.mrb[30].mxu1  ;;  %v707_v62 = vpop.f32.mrb[31].mxu0 }
 0x142   : > { %1438 = vst.msk [vmem:[%s2213_s17 + $0x78] sm:$0xff] %vm949_vm2, %v1179_v61  ;;  %v1181_v63 = vpop.f32.mrb[31].mxu1 }
 0x144   : > { %v710_v0 = vpop.f32.mrb[32].mxu0 }
 0x145   : > { %966 = vst.msk [vmem:[%s2206_s13 + $0x80] sm:$0xff] %vm949_vm2, %v710_v0  ;;  %v1184_v1 = vpop.f32.mrb[32].mxu1  ;;  %v712_v2 = vpop.f32.mrb[33].mxu0 }
 0x146   : > { %1439 = vst.msk [vmem:[%s2213_s17 + $0x80] sm:$0xff] %vm949_vm2, %v1184_v1  ;;  %v1186_v3 = vpop.f32.mrb[33].mxu1 }
 0x148   : > { %v715_v4 = vpop.f32.mrb[34].mxu0 }
 0x149   : > { %967 = vst.msk [vmem:[%s2206_s13 + $0x88] sm:$0xff] %vm949_vm2, %v715_v4  ;;  %v1189_v5 = vpop.f32.mrb[34].mxu1  ;;  %v717_v6 = vpop.f32.mrb[35].mxu0 }
 0x14a   : > { %1440 = vst.msk [vmem:[%s2213_s17 + $0x88] sm:$0xff] %vm949_vm2, %v1189_v5  ;;  %v1191_v7 = vpop.f32.mrb[35].mxu1 }
 0x14c   : > { %v720_v8 = vpop.f32.mrb[36].mxu0 }
 0x14d   : > { %968 = vst.msk [vmem:[%s2206_s13 + $0x90] sm:$0xff] %vm949_vm2, %v720_v8  ;;  %v1194_v9 = vpop.f32.mrb[36].mxu1  ;;  %v722_v10 = vpop.f32.mrb[37].mxu0 }
 0x14e   : > { %1441 = vst.msk [vmem:[%s2213_s17 + $0x90] sm:$0xff] %vm949_vm2, %v1194_v9  ;;  %v1196_v11 = vpop.f32.mrb[37].mxu1 }
 0x150   : > { %v725_v12 = vpop.f32.mrb[38].mxu0 }
 0x151   : > { %969 = vst.msk [vmem:[%s2206_s13 + $0x98] sm:$0xff] %vm949_vm2, %v725_v12  ;;  %v1199_v13 = vpop.f32.mrb[38].mxu1  ;;  %v727_v14 = vpop.f32.mrb[39].mxu0 }
 0x152   : > { %1442 = vst.msk [vmem:[%s2213_s17 + $0x98] sm:$0xff] %vm949_vm2, %v1199_v13  ;;  %v1201_v15 = vpop.f32.mrb[39].mxu1 }
 0x154   : > { %v730_v16 = vpop.f32.mrb[40].mxu0 }
 0x155   : > { %970 = vst.msk [vmem:[%s2206_s13 + $0xa0] sm:$0xff] %vm949_vm2, %v730_v16  ;;  %v1204_v17 = vpop.f32.mrb[40].mxu1  ;;  %v732_v18 = vpop.f32.mrb[41].mxu0 }
 0x156   : > { %1443 = vst.msk [vmem:[%s2213_s17 + $0xa0] sm:$0xff] %vm949_vm2, %v1204_v17  ;;  %v1206_v19 = vpop.f32.mrb[41].mxu1 }
 0x158   : > { %v735_v20 = vpop.f32.mrb[42].mxu0 }
 0x159   : > { %971 = vst.msk [vmem:[%s2206_s13 + $0xa8] sm:$0xff] %vm949_vm2, %v735_v20  ;;  %v1209_v21 = vpop.f32.mrb[42].mxu1  ;;  %v737_v22 = vpop.f32.mrb[43].mxu0 }
 0x15a   : > { %1444 = vst.msk [vmem:[%s2213_s17 + $0xa8] sm:$0xff] %vm949_vm2, %v1209_v21  ;;  %v1211_v23 = vpop.f32.mrb[43].mxu1 }
 0x15c   : > { %v740_v24 = vpop.f32.mrb[44].mxu0 }
 0x15d   : > { %972 = vst.msk [vmem:[%s2206_s13 + $0xb0] sm:$0xff] %vm949_vm2, %v740_v24  ;;  %v1214_v25 = vpop.f32.mrb[44].mxu1  ;;  %v742_v26 = vpop.f32.mrb[45].mxu0 }
 0x15e   : > { %1445 = vst.msk [vmem:[%s2213_s17 + $0xb0] sm:$0xff] %vm949_vm2, %v1214_v25  ;;  %v1216_v27 = vpop.f32.mrb[45].mxu1 }
 0x160   : > { %v745_v28 = vpop.f32.mrb[46].mxu0 }
 0x161   : > { %973 = vst.msk [vmem:[%s2206_s13 + $0xb8] sm:$0xff] %vm949_vm2, %v745_v28  ;;  %v1219_v29 = vpop.f32.mrb[46].mxu1  ;;  %v747_v30 = vpop.f32.mrb[47].mxu0 }
 0x162   : > { %1446 = vst.msk [vmem:[%s2213_s17 + $0xb8] sm:$0xff] %vm949_vm2, %v1219_v29  ;;  %v1221_v31 = vpop.f32.mrb[47].mxu1 }
 0x164   : > { %v750_v32 = vpop.f32.mrb[48].mxu0 }
 0x165   : > { %974 = vst.msk [vmem:[%s2206_s13 + $0xc0] sm:$0xff] %vm949_vm2, %v750_v32  ;;  %v1224_v33 = vpop.f32.mrb[48].mxu1  ;;  %v752_v34 = vpop.f32.mrb[49].mxu0 }
 0x166   : > { %1447 = vst.msk [vmem:[%s2213_s17 + $0xc0] sm:$0xff] %vm949_vm2, %v1224_v33  ;;  %v1226_v35 = vpop.f32.mrb[49].mxu1 }
 0x168   : > { %v755_v36 = vpop.f32.mrb[50].mxu0 }
 0x169   : > { %975 = vst.msk [vmem:[%s2206_s13 + $0xc8] sm:$0xff] %vm949_vm2, %v755_v36  ;;  %v1229_v37 = vpop.f32.mrb[50].mxu1  ;;  %v757_v38 = vpop.f32.mrb[51].mxu0 }
 0x16a   : > { %1448 = vst.msk [vmem:[%s2213_s17 + $0xc8] sm:$0xff] %vm949_vm2, %v1229_v37  ;;  %v1231_v39 = vpop.f32.mrb[51].mxu1 }
 0x16c   : > { %v760_v40 = vpop.f32.mrb[52].mxu0 }
 0x16d   : > { %976 = vst.msk [vmem:[%s2206_s13 + $0xd0] sm:$0xff] %vm949_vm2, %v760_v40  ;;  %v1234_v41 = vpop.f32.mrb[52].mxu1  ;;  %v762_v42 = vpop.f32.mrb[53].mxu0 }
 0x16e   : > { %1449 = vst.msk [vmem:[%s2213_s17 + $0xd0] sm:$0xff] %vm949_vm2, %v1234_v41  ;;  %v1236_v43 = vpop.f32.mrb[53].mxu1 }
 0x170   : > { %v765_v44 = vpop.f32.mrb[54].mxu0 }
 0x171   : > { %977 = vst.msk [vmem:[%s2206_s13 + $0xd8] sm:$0xff] %vm949_vm2, %v765_v44  ;;  %v1239_v45 = vpop.f32.mrb[54].mxu1  ;;  %v767_v46 = vpop.f32.mrb[55].mxu0 }
 0x172   : > { %1450 = vst.msk [vmem:[%s2213_s17 + $0xd8] sm:$0xff] %vm949_vm2, %v1239_v45  ;;  %v1241_v47 = vpop.f32.mrb[55].mxu1 }
 0x174   : > { %v770_v48 = vpop.f32.mrb[56].mxu0 }
 0x175   : > { %978 = vst.msk [vmem:[%s2206_s13 + $0xe0] sm:$0xff] %vm949_vm2, %v770_v48  ;;  %v1244_v49 = vpop.f32.mrb[56].mxu1  ;;  %v772_v50 = vpop.f32.mrb[57].mxu0 }
 0x176   : > { %1451 = vst.msk [vmem:[%s2213_s17 + $0xe0] sm:$0xff] %vm949_vm2, %v1244_v49  ;;  %v1246_v51 = vpop.f32.mrb[57].mxu1 }
 0x178   : > { %v775_v52 = vpop.f32.mrb[58].mxu0 }
 0x179   : > { %979 = vst.msk [vmem:[%s2206_s13 + $0xe8] sm:$0xff] %vm949_vm2, %v775_v52  ;;  %v1249_v53 = vpop.f32.mrb[58].mxu1  ;;  %v777_v54 = vpop.f32.mrb[59].mxu0 }
 0x17a   : > { %1452 = vst.msk [vmem:[%s2213_s17 + $0xe8] sm:$0xff] %vm949_vm2, %v1249_v53  ;;  %v1251_v55 = vpop.f32.mrb[59].mxu1 }
 0x17c   : > { %v780_v56 = vpop.f32.mrb[60].mxu0 }
 0x17d   : > { %980 = vst.msk [vmem:[%s2206_s13 + $0xf0] sm:$0xff] %vm949_vm2, %v780_v56  ;;  %v1254_v57 = vpop.f32.mrb[60].mxu1  ;;  %v782_v58 = vpop.f32.mrb[61].mxu0 }
 0x17e   : > { %1453 = vst.msk [vmem:[%s2213_s17 + $0xf0] sm:$0xff] %vm949_vm2, %v1254_v57  ;;  %v1256_v59 = vpop.f32.mrb[61].mxu1 }
 0x180   : > { %v785_v60 = vpop.f32.mrb[62].mxu0 }
 0x181   : > { %981 = vst.msk [vmem:[%s2206_s13 + $0xf8] sm:$0xff] %vm949_vm2, %v785_v60  ;;  %v1259_v61 = vpop.f32.mrb[62].mxu1  ;;  %v787_v62 = vpop.f32.mrb[63].mxu0 }
 0x182   : > { %1454 = vst.msk [vmem:[%s2213_s17 + $0xf8] sm:$0xff] %vm949_vm2, %v1259_v61  ;;  %v1261_v63 = vpop.f32.mrb[63].mxu1 }
 0x184   : > { %v790_v0 = vpop.f32.mrb[64].mxu0 }
 0x185   : > { %982 = vst.msk [vmem:[%s2206_s13 + $0x100] sm:$0xff] %vm949_vm2, %v790_v0  ;;  %v1264_v1 = vpop.f32.mrb[64].mxu1  ;;  %v792_v2 = vpop.f32.mrb[65].mxu0 }
 0x186   : > { %1455 = vst.msk [vmem:[%s2213_s17 + $0x100] sm:$0xff] %vm949_vm2, %v1264_v1  ;;  %v1266_v3 = vpop.f32.mrb[65].mxu1 }
 0x188   : > { %v795_v4 = vpop.f32.mrb[66].mxu0 }
 0x189   : > { %983 = vst.msk [vmem:[%s2206_s13 + $0x108] sm:$0xff] %vm949_vm2, %v795_v4  ;;  %v1269_v5 = vpop.f32.mrb[66].mxu1  ;;  %v797_v6 = vpop.f32.mrb[67].mxu0 }
 0x18a   : > { %1456 = vst.msk [vmem:[%s2213_s17 + $0x108] sm:$0xff] %vm949_vm2, %v1269_v5  ;;  %v1271_v7 = vpop.f32.mrb[67].mxu1 }
 0x18c   : > { %v800_v8 = vpop.f32.mrb[68].mxu0 }
 0x18d   : > { %984 = vst.msk [vmem:[%s2206_s13 + $0x110] sm:$0xff] %vm949_vm2, %v800_v8  ;;  %v1274_v9 = vpop.f32.mrb[68].mxu1  ;;  %v802_v10 = vpop.f32.mrb[69].mxu0 }
 0x18e   : > { %1457 = vst.msk [vmem:[%s2213_s17 + $0x110] sm:$0xff] %vm949_vm2, %v1274_v9  ;;  %v1276_v11 = vpop.f32.mrb[69].mxu1 }
 0x190   : > { %v805_v12 = vpop.f32.mrb[70].mxu0 }
 0x191   : > { %985 = vst.msk [vmem:[%s2206_s13 + $0x118] sm:$0xff] %vm949_vm2, %v805_v12  ;;  %v1279_v13 = vpop.f32.mrb[70].mxu1  ;;  %v807_v14 = vpop.f32.mrb[71].mxu0 }
 0x192   : > { %1458 = vst.msk [vmem:[%s2213_s17 + $0x118] sm:$0xff] %vm949_vm2, %v1279_v13  ;;  %v1281_v15 = vpop.f32.mrb[71].mxu1 }
 0x194   : > { %v810_v16 = vpop.f32.mrb[72].mxu0 }
 0x195   : > { %986 = vst.msk [vmem:[%s2206_s13 + $0x120] sm:$0xff] %vm949_vm2, %v810_v16  ;;  %v1284_v17 = vpop.f32.mrb[72].mxu1  ;;  %v812_v18 = vpop.f32.mrb[73].mxu0 }
 0x196   : > { %1459 = vst.msk [vmem:[%s2213_s17 + $0x120] sm:$0xff] %vm949_vm2, %v1284_v17  ;;  %v1286_v19 = vpop.f32.mrb[73].mxu1 }
 0x198   : > { %v815_v20 = vpop.f32.mrb[74].mxu0 }
 0x199   : > { %987 = vst.msk [vmem:[%s2206_s13 + $0x128] sm:$0xff] %vm949_vm2, %v815_v20  ;;  %v1289_v21 = vpop.f32.mrb[74].mxu1  ;;  %v817_v22 = vpop.f32.mrb[75].mxu0 }
 0x19a   : > { %1460 = vst.msk [vmem:[%s2213_s17 + $0x128] sm:$0xff] %vm949_vm2, %v1289_v21  ;;  %v1291_v23 = vpop.f32.mrb[75].mxu1 }
 0x19c   : > { %v820_v24 = vpop.f32.mrb[76].mxu0 }
 0x19d   : > { %988 = vst.msk [vmem:[%s2206_s13 + $0x130] sm:$0xff] %vm949_vm2, %v820_v24  ;;  %v1294_v25 = vpop.f32.mrb[76].mxu1  ;;  %v822_v26 = vpop.f32.mrb[77].mxu0 }
 0x19e   : > { %1461 = vst.msk [vmem:[%s2213_s17 + $0x130] sm:$0xff] %vm949_vm2, %v1294_v25  ;;  %v1296_v27 = vpop.f32.mrb[77].mxu1 }
 0x1a0   : > { %v825_v28 = vpop.f32.mrb[78].mxu0 }
 0x1a1   : > { %989 = vst.msk [vmem:[%s2206_s13 + $0x138] sm:$0xff] %vm949_vm2, %v825_v28  ;;  %v1299_v29 = vpop.f32.mrb[78].mxu1  ;;  %v827_v30 = vpop.f32.mrb[79].mxu0 }
 0x1a2   : > { %1462 = vst.msk [vmem:[%s2213_s17 + $0x138] sm:$0xff] %vm949_vm2, %v1299_v29  ;;  %v1301_v31 = vpop.f32.mrb[79].mxu1 }
 0x1a4   : > { %v830_v32 = vpop.f32.mrb[80].mxu0 }
 0x1a5   : > { %990 = vst.msk [vmem:[%s2206_s13 + $0x140] sm:$0xff] %vm949_vm2, %v830_v32  ;;  %v1304_v33 = vpop.f32.mrb[80].mxu1  ;;  %v832_v34 = vpop.f32.mrb[81].mxu0 }
 0x1a6   : > { %1463 = vst.msk [vmem:[%s2213_s17 + $0x140] sm:$0xff] %vm949_vm2, %v1304_v33  ;;  %v1306_v35 = vpop.f32.mrb[81].mxu1 }
 0x1a8   : > { %v835_v36 = vpop.f32.mrb[82].mxu0 }
 0x1a9   : > { %991 = vst.msk [vmem:[%s2206_s13 + $0x148] sm:$0xff] %vm949_vm2, %v835_v36  ;;  %v1309_v37 = vpop.f32.mrb[82].mxu1  ;;  %v837_v38 = vpop.f32.mrb[83].mxu0 }
 0x1aa   : > { %1464 = vst.msk [vmem:[%s2213_s17 + $0x148] sm:$0xff] %vm949_vm2, %v1309_v37  ;;  %v1311_v39 = vpop.f32.mrb[83].mxu1 }
 0x1ac   : > { %v840_v40 = vpop.f32.mrb[84].mxu0 }
 0x1ad   : > { %992 = vst.msk [vmem:[%s2206_s13 + $0x150] sm:$0xff] %vm949_vm2, %v840_v40  ;;  %v1314_v41 = vpop.f32.mrb[84].mxu1  ;;  %v842_v42 = vpop.f32.mrb[85].mxu0 }
 0x1ae   : > { %1465 = vst.msk [vmem:[%s2213_s17 + $0x150] sm:$0xff] %vm949_vm2, %v1314_v41  ;;  %v1316_v43 = vpop.f32.mrb[85].mxu1 }
 0x1b0   : > { %v845_v44 = vpop.f32.mrb[86].mxu0 }
 0x1b1   : > { %993 = vst.msk [vmem:[%s2206_s13 + $0x158] sm:$0xff] %vm949_vm2, %v845_v44  ;;  %v1319_v45 = vpop.f32.mrb[86].mxu1  ;;  %v847_v46 = vpop.f32.mrb[87].mxu0 }
 0x1b2   : > { %1466 = vst.msk [vmem:[%s2213_s17 + $0x158] sm:$0xff] %vm949_vm2, %v1319_v45  ;;  %v1321_v47 = vpop.f32.mrb[87].mxu1 }
 0x1b4   : > { %v850_v48 = vpop.f32.mrb[88].mxu0 }
 0x1b5   : > { %994 = vst.msk [vmem:[%s2206_s13 + $0x160] sm:$0xff] %vm949_vm2, %v850_v48  ;;  %v1324_v49 = vpop.f32.mrb[88].mxu1  ;;  %v852_v50 = vpop.f32.mrb[89].mxu0 }
 0x1b6   : > { %1467 = vst.msk [vmem:[%s2213_s17 + $0x160] sm:$0xff] %vm949_vm2, %v1324_v49  ;;  %v1326_v51 = vpop.f32.mrb[89].mxu1 }
 0x1b8   : > { %v855_v52 = vpop.f32.mrb[90].mxu0 }
 0x1b9   : > { %995 = vst.msk [vmem:[%s2206_s13 + $0x168] sm:$0xff] %vm949_vm2, %v855_v52  ;;  %v1329_v53 = vpop.f32.mrb[90].mxu1  ;;  %v857_v54 = vpop.f32.mrb[91].mxu0 }
 0x1ba   : > { %1468 = vst.msk [vmem:[%s2213_s17 + $0x168] sm:$0xff] %vm949_vm2, %v1329_v53  ;;  %v1331_v55 = vpop.f32.mrb[91].mxu1 }
 0x1bc   : > { %v860_v56 = vpop.f32.mrb[92].mxu0 }
 0x1bd   : > { %996 = vst.msk [vmem:[%s2206_s13 + $0x170] sm:$0xff] %vm949_vm2, %v860_v56  ;;  %v1334_v57 = vpop.f32.mrb[92].mxu1  ;;  %v862_v58 = vpop.f32.mrb[93].mxu0 }
 0x1be   : > { %1469 = vst.msk [vmem:[%s2213_s17 + $0x170] sm:$0xff] %vm949_vm2, %v1334_v57  ;;  %v1336_v59 = vpop.f32.mrb[93].mxu1 }
 0x1c0   : > { %v865_v60 = vpop.f32.mrb[94].mxu0 }
 0x1c1   : > { %997 = vst.msk [vmem:[%s2206_s13 + $0x178] sm:$0xff] %vm949_vm2, %v865_v60  ;;  %v1339_v61 = vpop.f32.mrb[94].mxu1  ;;  %v867_v62 = vpop.f32.mrb[95].mxu0 }
 0x1c2   : > { %1470 = vst.msk [vmem:[%s2213_s17 + $0x178] sm:$0xff] %vm949_vm2, %v1339_v61  ;;  %v1341_v63 = vpop.f32.mrb[95].mxu1 }
 0x1c4   : > { %v870_v0 = vpop.f32.mrb[96].mxu0 }
 0x1c5   : > { %998 = vst.msk [vmem:[%s2206_s13 + $0x180] sm:$0xff] %vm949_vm2, %v870_v0  ;;  %v1344_v1 = vpop.f32.mrb[96].mxu1  ;;  %v872_v2 = vpop.f32.mrb[97].mxu0 }
 0x1c6   : > { %1471 = vst.msk [vmem:[%s2213_s17 + $0x180] sm:$0xff] %vm949_vm2, %v1344_v1  ;;  %v1346_v3 = vpop.f32.mrb[97].mxu1 }
 0x1c8   : > { %v875_v4 = vpop.f32.mrb[98].mxu0 }
 0x1c9   : > { %999 = vst.msk [vmem:[%s2206_s13 + $0x188] sm:$0xff] %vm949_vm2, %v875_v4  ;;  %v1349_v5 = vpop.f32.mrb[98].mxu1  ;;  %v877_v6 = vpop.f32.mrb[99].mxu0 }
 0x1ca   : > { %1472 = vst.msk [vmem:[%s2213_s17 + $0x188] sm:$0xff] %vm949_vm2, %v1349_v5  ;;  %v1351_v7 = vpop.f32.mrb[99].mxu1 }
 0x1cc   : > { %v880_v8 = vpop.f32.mrb[100].mxu0 }
 0x1cd   : > { %1000 = vst.msk [vmem:[%s2206_s13 + $0x190] sm:$0xff] %vm949_vm2, %v880_v8  ;;  %v1354_v9 = vpop.f32.mrb[100].mxu1  ;;  %v882_v10 = vpop.f32.mrb[101].mxu0 }
 0x1ce   : > { %1473 = vst.msk [vmem:[%s2213_s17 + $0x190] sm:$0xff] %vm949_vm2, %v1354_v9  ;;  %v1356_v11 = vpop.f32.mrb[101].mxu1 }
 0x1d0   : > { %v885_v12 = vpop.f32.mrb[102].mxu0 }
 0x1d1   : > { %1001 = vst.msk [vmem:[%s2206_s13 + $0x198] sm:$0xff] %vm949_vm2, %v885_v12  ;;  %v1359_v13 = vpop.f32.mrb[102].mxu1  ;;  %v887_v14 = vpop.f32.mrb[103].mxu0 }
 0x1d2   : > { %1474 = vst.msk [vmem:[%s2213_s17 + $0x198] sm:$0xff] %vm949_vm2, %v1359_v13  ;;  %v1361_v15 = vpop.f32.mrb[103].mxu1 }
 0x1d4   : > { %v890_v16 = vpop.f32.mrb[104].mxu0 }
 0x1d5   : > { %1002 = vst.msk [vmem:[%s2206_s13 + $0x1a0] sm:$0xff] %vm949_vm2, %v890_v16  ;;  %v1364_v17 = vpop.f32.mrb[104].mxu1  ;;  %v892_v18 = vpop.f32.mrb[105].mxu0 }
 0x1d6   : > { %1475 = vst.msk [vmem:[%s2213_s17 + $0x1a0] sm:$0xff] %vm949_vm2, %v1364_v17  ;;  %v1366_v19 = vpop.f32.mrb[105].mxu1 }
 0x1d8   : > { %v895_v20 = vpop.f32.mrb[106].mxu0 }
 0x1d9   : > { %1003 = vst.msk [vmem:[%s2206_s13 + $0x1a8] sm:$0xff] %vm949_vm2, %v895_v20  ;;  %v1369_v21 = vpop.f32.mrb[106].mxu1  ;;  %v897_v22 = vpop.f32.mrb[107].mxu0 }
 0x1da   : > { %1476 = vst.msk [vmem:[%s2213_s17 + $0x1a8] sm:$0xff] %vm949_vm2, %v1369_v21  ;;  %v1371_v23 = vpop.f32.mrb[107].mxu1 }
 0x1dc   : > { %v900_v24 = vpop.f32.mrb[108].mxu0 }
 0x1dd   : > { %1004 = vst.msk [vmem:[%s2206_s13 + $0x1b0] sm:$0xff] %vm949_vm2, %v900_v24  ;;  %v1374_v25 = vpop.f32.mrb[108].mxu1  ;;  %v902_v26 = vpop.f32.mrb[109].mxu0 }
 0x1de   : > { %1477 = vst.msk [vmem:[%s2213_s17 + $0x1b0] sm:$0xff] %vm949_vm2, %v1374_v25  ;;  %v1376_v27 = vpop.f32.mrb[109].mxu1 }
 0x1e0   : > { %v905_v28 = vpop.f32.mrb[110].mxu0 }
 0x1e1   : > { %1005 = vst.msk [vmem:[%s2206_s13 + $0x1b8] sm:$0xff] %vm949_vm2, %v905_v28  ;;  %v1379_v29 = vpop.f32.mrb[110].mxu1  ;;  %v907_v30 = vpop.f32.mrb[111].mxu0 }
 0x1e2   : > { %1478 = vst.msk [vmem:[%s2213_s17 + $0x1b8] sm:$0xff] %vm949_vm2, %v1379_v29  ;;  %v1381_v31 = vpop.f32.mrb[111].mxu1 }
 0x1e4   : > { %v910_v32 = vpop.f32.mrb[112].mxu0 }
 0x1e5   : > { %1006 = vst.msk [vmem:[%s2206_s13 + $0x1c0] sm:$0xff] %vm949_vm2, %v910_v32  ;;  %v1384_v33 = vpop.f32.mrb[112].mxu1  ;;  %v912_v34 = vpop.f32.mrb[113].mxu0 }
 0x1e6   : > { %1479 = vst.msk [vmem:[%s2213_s17 + $0x1c0] sm:$0xff] %vm949_vm2, %v1384_v33  ;;  %v1386_v35 = vpop.f32.mrb[113].mxu1 }
 0x1e8   : > { %v915_v36 = vpop.f32.mrb[114].mxu0 }
 0x1e9   : > { %1007 = vst.msk [vmem:[%s2206_s13 + $0x1c8] sm:$0xff] %vm949_vm2, %v915_v36  ;;  %v1389_v37 = vpop.f32.mrb[114].mxu1  ;;  %v917_v38 = vpop.f32.mrb[115].mxu0 }
 0x1ea   : > { %1480 = vst.msk [vmem:[%s2213_s17 + $0x1c8] sm:$0xff] %vm949_vm2, %v1389_v37  ;;  %v1391_v39 = vpop.f32.mrb[115].mxu1 }
 0x1ec   : > { %v920_v40 = vpop.f32.mrb[116].mxu0 }
 0x1ed   : > { %1008 = vst.msk [vmem:[%s2206_s13 + $0x1d0] sm:$0xff] %vm949_vm2, %v920_v40  ;;  %v1394_v41 = vpop.f32.mrb[116].mxu1  ;;  %v922_v42 = vpop.f32.mrb[117].mxu0 }
 0x1ee   : > { %1481 = vst.msk [vmem:[%s2213_s17 + $0x1d0] sm:$0xff] %vm949_vm2, %v1394_v41  ;;  %v1396_v43 = vpop.f32.mrb[117].mxu1 }
 0x1f0   : > { %v925_v44 = vpop.f32.mrb[118].mxu0 }
 0x1f1   : > { %1009 = vst.msk [vmem:[%s2206_s13 + $0x1d8] sm:$0xff] %vm949_vm2, %v925_v44  ;;  %v1399_v45 = vpop.f32.mrb[118].mxu1  ;;  %v927_v46 = vpop.f32.mrb[119].mxu0 }
 0x1f2   : > { %1482 = vst.msk [vmem:[%s2213_s17 + $0x1d8] sm:$0xff] %vm949_vm2, %v1399_v45  ;;  %v1401_v47 = vpop.f32.mrb[119].mxu1 }
 0x1f4   : > { %v930_v48 = vpop.f32.mrb[120].mxu0 }
 0x1f5   : > { %1010 = vst.msk [vmem:[%s2206_s13 + $0x1e0] sm:$0xff] %vm949_vm2, %v930_v48  ;;  %v1404_v49 = vpop.f32.mrb[120].mxu1  ;;  %v932_v50 = vpop.f32.mrb[121].mxu0 }
 0x1f6   : > { %1483 = vst.msk [vmem:[%s2213_s17 + $0x1e0] sm:$0xff] %vm949_vm2, %v1404_v49  ;;  %v1406_v51 = vpop.f32.mrb[121].mxu1 }
 0x1f8   : > { %v935_v52 = vpop.f32.mrb[122].mxu0 }
 0x1f9   : > { %1011 = vst.msk [vmem:[%s2206_s13 + $0x1e8] sm:$0xff] %vm949_vm2, %v935_v52  ;;  %v1409_v53 = vpop.f32.mrb[122].mxu1  ;;  %v937_v54 = vpop.f32.mrb[123].mxu0 }
 0x1fa   : > { %1484 = vst.msk [vmem:[%s2213_s17 + $0x1e8] sm:$0xff] %vm949_vm2, %v1409_v53  ;;  %v1411_v55 = vpop.f32.mrb[123].mxu1 }
 0x1fc   : > { %v940_v56 = vpop.f32.mrb[124].mxu0 }
 0x1fd   : > { %1012 = vst.msk [vmem:[%s2206_s13 + $0x1f0] sm:$0xff] %vm949_vm2, %v940_v56  ;;  %v1414_v57 = vpop.f32.mrb[124].mxu1  ;;  %v942_v58 = vpop.f32.mrb[125].mxu0 }
 0x1fe   : > { %1485 = vst.msk [vmem:[%s2213_s17 + $0x1f0] sm:$0xff] %vm949_vm2, %v1414_v57  ;;  %v1416_v59 = vpop.f32.mrb[125].mxu1 }
 0x200   : > { %v945_v60 = vpop.f32.mrb[126].mxu0 }
 0x201   : > { %1013 = vst.msk [vmem:[%s2206_s13 + $0x1f8] sm:$0xff] %vm949_vm2, %v945_v60  ;;  %v1419_v61 = vpop.f32.mrb[126].mxu1  ;;  %v947_v62 = vpop.f32.mrb[127].mxu0 }
 0x202   : > { %1486 = vst.msk [vmem:[%s2213_s17 + $0x1f8] sm:$0xff] %vm949_vm2, %v1419_v61  ;;  %v1421_v63 = vpop.f32.mrb[127].mxu1 }
 0x203 PF: > { %s15_s15 = sadd.s32 1, %s1798_s15  }
 0x204   : > { %p12_p4 = scmp.ge.s32.totalorder %s15_s15, 4  }
 0x206   :  { %14 = sbr.rel (!%p12_p4) target bundleno = 1 (0x1), region = 74 }

</bundles_post_ra>
